<compile_context>
chip_gen: v7x
topology: tpu7x:2x2x1
jax: 0.10.0
libtpu: 0.0.40
codegen_flags: <defaults>
</compile_context>

<pallas_src>
import functools

import jax
import jax.numpy as jnp
import numpy as np
from jax.experimental import pallas as pl
from jax.experimental.pallas import tpu as pltpu


def mma_kernel(x_ref, gamma_ref, beta_ref, gmat_ref, w1t_ref, b1_ref,
               w2te_ref, b2_ref, o_ref, *, eps, exp_dtype):
    """Per grid step: B frames, each (C, HW).  GroupNorm -> folded phi/mb ->
    softmax -> folded mb^T/W_z1 (+ fused denominator row) -> residual."""
    B, C, HW = x_ref.shape

    def frame(f, carry):
        xf = x_ref[f].astype(jnp.float32)                        # (C, HW)

        # ---- GroupNorm(32) stats: per-channel, then one tiny group dot ----
        cm = jnp.mean(xf, axis=1, keepdims=True)                 # (C, 1)
        cs = jnp.mean(xf * xf, axis=1, keepdims=True)            # (C, 1)
        stats = jnp.concatenate([cm, cs], axis=1)                # (C, 2)
        grp = jnp.dot(gmat_ref[...], stats,
                      preferred_element_type=jnp.float32)        # (C, 2)
        g_mean = grp[:, 0:1]
        g_msq = grp[:, 1:2]
        var = jnp.maximum(g_msq - g_mean * g_mean, 0.0)          # clamp: cancellation
        inv_std = jax.lax.rsqrt(var + eps)                       # (C, 1)

        # ---- fused affine normalize: q = x * s + t (one FMA / element) ----
        s = inv_std * gamma_ref[...]
        t = beta_ref[...] - g_mean * s
        q = (xf * s + t).astype(jnp.bfloat16)                    # (C, HW)

        # ---- logits^T = W1^T @ q + b1 : (M, HW), bf16 MXU, f32 acc --------
        logits = jnp.dot(w1t_ref[...], q,
                         preferred_element_type=jnp.float32) + b1_ref[...]

        # ---- softmax over memory slots (sublane axis); divide deferred ----
        mx = jnp.max(logits, axis=0, keepdims=True)              # (1, HW)
        e = jnp.exp((logits - mx).astype(exp_dtype))             # bf16 on v6e/v7x
        e_mm = e.astype(jnp.bfloat16)

        # ---- [W2^T ; 1] @ e : rows :C are y, row C is the softmax denom ---
        ye = jnp.dot(w2te_ref[...], e_mm,
                     preferred_element_type=jnp.float32)         # (C+1, HW)
        y = ye[:C, :]
        denom = ye[C:C + 1, :]                                   # f32 MXU sum

        out = (y * pl.reciprocal(denom, approx=True) + b2_ref[...]
               + x_ref[f].astype(jnp.float32))                   # residual re-read
        o_ref[f] = out.astype(o_ref.dtype)
        return carry

    jax.lax.fori_loop(0, B, frame, 0, unroll=False)


def _tpu_tuning():
    """(vmem_capacity_bytes, bf16_vector_ok, multi_tensorcore) for this chip."""
    kind = ""
    try:
        kind = jax.devices()[0].device_kind.lower()
    except Exception:
        pass
    vmem_cap = 64 * 1024 * 1024            # conservative default
    try:
        vmem_cap = int(pltpu.get_tpu_info().vmem_capacity_bytes)
    except Exception:
        if ("v5 lite" in kind) or ("v5e" in kind) or ("v6" in kind):
            vmem_cap = 128 * 1024 * 1024
    bf16_vector_ok = ("v6" in kind) or ("v7" in kind) or ("7x" in kind)
    multi_tc = ("v7" in kind) or ("7x" in kind)
    return vmem_cap, bf16_vector_ok, multi_tc


def _pick_frames_per_step(nt, hw, c, m, budget_bytes, prefer_even_grid):
    """Largest frame-block B (divisor of nt) fitting the VMEM budget.

    Accounts for double-buffered in/out blocks, the folded/padded weights and
    the per-frame f32/bf16 intermediates that stay live inside the frame loop.
    """
    per_frame_live = hw * (14 * c + 8 * m + 4)   # xf,q,out + logits,e,ye
    weights = 3 << 20                            # folded weights/biases, padded, 2x buffered
    per_frame_io = 16 * c * hw                   # in+out f32 blocks, double-buffered
    avail = budget_bytes - per_frame_live - weights
    bmax = int(max(1, min(nt, (avail // per_frame_io) if avail > 0 else 1)))
    divs = [d for d in range(1, nt + 1) if nt % d == 0 and d <= bmax]
    if prefer_even_grid:
        even = [d for d in divs if (nt // d) >= 2 and (nt // d) % 2 == 0]
        if even:
            return max(even)
    return max(divs)


def mma_forward(x, params, *, num_groups=32):
    """x: (N, T, C, H, W) float32.  Returns (N, T, C, H, W)."""
    N, T, C, H, W = x.shape
    HW = H * W
    NT = N * T

    # Model-native layout: (N*T, C, HW) -- reshape only, no host transpose.
    xr = x.reshape(NT, C, HW)

    # ---- host-side weight folding (two MXU matmuls per frame, transposed) --
    scale = float(C) ** (-0.5)
    w_phi = params["w_phi"].astype(jnp.float32)
    b_phi = params["b_phi"].astype(jnp.float32)
    w_z1 = params["w_z1"].astype(jnp.float32)
    b_z1 = params["b_z1"].astype(jnp.float32)
    mb = params["mb"].astype(jnp.float32)
    M = mb.shape[1]

    w1t = (mb.T @ w_phi) * scale                                 # (M, C)
    b1 = ((b_phi @ mb) * scale).reshape(M, 1)                    # (M, 1)
    w2t = w_z1 @ mb                                              # (C, M)
    w2te = jnp.concatenate([w2t, jnp.ones((1, M), jnp.float32)], axis=0)  # (C+1, M)
    b2 = b_z1.reshape(C, 1)                                      # (C, 1)

    gamma = params["gamma"].reshape(C, 1).astype(jnp.float32)
    beta = params["beta"].reshape(C, 1).astype(jnp.float32)

    gc = C // num_groups
    gid = jnp.arange(C) // gc
    gmat = (gid[:, None] == gid[None, :]).astype(jnp.float32) / float(gc)  # (C, C)

    # ---- per-generation tuning ---------------------------------------------
    vmem_cap, bf16_vec, multi_tc = _tpu_tuning()
    budget = min(int(vmem_cap * 0.6), 80 * 1024 * 1024)
    vmem_limit = max(min(int(vmem_cap * 0.8), 112 * 1024 * 1024), 32 * 1024 * 1024)
    exp_dtype = jnp.bfloat16 if bf16_vec else jnp.float32
    B = _pick_frames_per_step(NT, HW, C, M, budget, prefer_even_grid=multi_tc)
    # TODO(synk): for very large H*W the per-frame (M, HW) intermediates alone
    # can exceed VMEM; an HW-tiling grid axis (with two-pass GroupNorm stats)
    # would be needed in that regime.

    cost = pl.CostEstimate(
        flops=int(NT * 2 * M * HW * (2 * C + 1)),
        transcendentals=int(NT * (M * HW + HW + C)),
        bytes_accessed=int(2 * NT * C * HW * 4
                           + (M * C + (C + 1) * M) * 2
                           + (M + 3 * C + C * C) * 4))

    def full(shape):
        return pl.BlockSpec(shape, lambda i, _s=shape: tuple(0 for _ in _s))

    out = pl.pallas_call(
        functools.partial(mma_kernel, eps=1e-6, exp_dtype=exp_dtype),
        out_shape=jax.ShapeDtypeStruct((NT, C, HW), x.dtype),
        grid=(NT // B,),
        in_specs=[
            pl.BlockSpec((B, C, HW), lambda i: (i, 0, 0)),   # x frames (native layout)
            full((C, 1)),                                    # gamma
            full((C, 1)),                                    # beta
            full((C, C)),                                    # group-averaging matrix
            full((M, C)),                                    # W1^T (bf16)
            full((M, 1)),                                    # b1
            full((C + 1, M)),                                # [W2^T ; ones] (bf16)
            full((C, 1)),                                    # b2
        ],
        out_specs=pl.BlockSpec((B, C, HW), lambda i: (i, 0, 0)),
        compiler_params=pltpu.CompilerParams(
            dimension_semantics=("parallel",),
            vmem_limit_bytes=vmem_limit),
        cost_estimate=cost,
    )(xr, gamma, beta, gmat,
      w1t.astype(jnp.bfloat16), b1, w2te.astype(jnp.bfloat16), b2)

    return out.reshape(N, T, C, H, W)


def mma_reference(x, params):
    """Pure-JAX reference mirroring the intended PyTorch forward."""
    N, T, C, H, W = x.shape
    num_groups = 32
    gc = C // num_groups
    outs = []
    for i in range(T):
        q = x[:, i]                                               # (N, C, H, W)
        qg = q.reshape(N, num_groups, gc * H * W)
        mu = qg.mean(-1, keepdims=True)
        var = qg.var(-1, keepdims=True)
        qn = ((qg - mu) / jnp.sqrt(var + 1e-6)).reshape(N, C, H, W)
        qn = qn * params["gamma"].reshape(1, C, 1, 1) + params["beta"].reshape(1, C, 1, 1)
        phi = jnp.einsum("oc,nchw->nohw", params["w_phi"], qn) + params["b_phi"].reshape(1, C, 1, 1)
        phi = phi.reshape(N, C, H * W).transpose(0, 2, 1)         # (N, HW, C)
        f1 = (phi @ params["mb"]) * (float(C) ** (-0.5))
        soft = jax.nn.softmax(f1, axis=-1)
        y1 = soft @ params["mb"].T                                # (N, HW, C)
        y1 = y1.transpose(0, 2, 1).reshape(N, C, H, W)
        wy1 = jnp.einsum("oc,nchw->nohw", params["w_z1"], y1) + params["b_z1"].reshape(1, C, 1, 1)
        outs.append(wy1 + q)
    return jnp.stack(outs, axis=1)


def init_params(key, channels, mem_slots=512):
    k1, k2, k3, k4, k5 = jax.random.split(key, 5)
    # NOTE: the module's __init__ zeroes W_z1 (branch is identity at init); we
    # use small random values so the full kernel path is exercised.
    return {
        "gamma": jnp.ones((channels,), jnp.float32),
        "beta": jnp.zeros((channels,), jnp.float32),
        "w_phi": 0.1 * jax.random.normal(k1, (channels, channels), jnp.float32),
        "b_phi": 0.1 * jax.random.normal(k2, (channels,), jnp.float32),
        "mb": jax.random.normal(k3, (channels, mem_slots), jnp.float32),
        "w_z1": 0.1 * jax.random.normal(k4, (channels, channels), jnp.float32),
        "b_z1": 0.1 * jax.random.normal(k5, (channels,), jnp.float32),
    }


if __name__ == "__main__":
    key = jax.random.PRNGKey(0)
    kx, kp = jax.random.split(key)

    # MMA is applied to feat_extract output: channels = mid_channels = 64
    # (must be divisible by the 32 GroupNorm groups), memory bank has 512 slots.
    N, T, C, H, W = 2, 2, 64, 8, 8
    x = jax.random.normal(kx, (N, T, C, H, W), jnp.float32)
    params = init_params(kp, C, mem_slots=512)

    out = jax.block_until_ready(mma_forward(x, params))

    ref = mma_reference(x, params)
    assert out.shape == (N, T, C, H, W)
    np.testing.assert_allclose(np.asarray(out), np.asarray(ref), rtol=1e-2, atol=1e-2)

    print("KERNEL_OK")
</pallas_src>

<mosaic_0001>
module attributes {stable_mosaic.version = 11 : i64} {
  func.func @mma_kernel(%arg0: i32, %arg1: memref<4x64x64xf32, #tpu.memory_space<vmem>>, %arg2: memref<64x1xf32, #tpu.memory_space<vmem>>, %arg3: memref<64x1xf32, #tpu.memory_space<vmem>>, %arg4: memref<64x64xf32, #tpu.memory_space<vmem>>, %arg5: memref<512x64xbf16, #tpu.memory_space<vmem>>, %arg6: memref<512x1xf32, #tpu.memory_space<vmem>>, %arg7: memref<65x512xbf16, #tpu.memory_space<vmem>>, %arg8: memref<64x1xf32, #tpu.memory_space<vmem>>, %arg9: memref<4x64x64xf32, #tpu.memory_space<vmem>>) attributes {dimension_semantics = [#tpu.dimension_semantics<parallel>], iteration_bounds = array<i64: 1>, scalar_prefetch = 0 : i64, scratch_operands = 0 : i64, tpu.core_type = #tpu.core_type<tc>, window_params = [{transform_indices = @transform_0, window_bounds = array<i64: 4, 64, 64>}, {pipeline_mode = #tpu.pipeline_mode<synchronous>, transform_indices = @transform_1, window_bounds = array<i64: 64, 1>}, {pipeline_mode = #tpu.pipeline_mode<synchronous>, transform_indices = @transform_2, window_bounds = array<i64: 64, 1>}, {pipeline_mode = #tpu.pipeline_mode<synchronous>, transform_indices = @transform_3, window_bounds = array<i64: 64, 64>}, {pipeline_mode = #tpu.pipeline_mode<synchronous>, transform_indices = @transform_4, window_bounds = array<i64: 512, 64>}, {pipeline_mode = #tpu.pipeline_mode<synchronous>, transform_indices = @transform_5, window_bounds = array<i64: 512, 1>}, {pipeline_mode = #tpu.pipeline_mode<synchronous>, transform_indices = @transform_6, window_bounds = array<i64: 65, 512>}, {pipeline_mode = #tpu.pipeline_mode<synchronous>, transform_indices = @transform_7, window_bounds = array<i64: 64, 1>}, {transform_indices = @transform_8, window_bounds = array<i64: 4, 64, 64>}]} {
    %c0_i32 = arith.constant 0 : i32
    %c4_i32 = arith.constant 4 : i32
    %0 = arith.addi %c0_i32, %c4_i32 : i32
    %c1_i32 = arith.constant 1 : i32
    scf.for %arg10 = %c0_i32 to %0 step %c1_i32  : i32 {
      %1 = arith.index_cast %arg10 : i32 to index
      %c0 = arith.constant 0 : index
      %c0_1 = arith.constant 0 : index
      %2 = vector.load %arg1[%1, %c0, %c0_1] : memref<4x64x64xf32, #tpu.memory_space<vmem>>, vector<1x64x64xf32>
      %3 = vector.shape_cast %2 : vector<1x64x64xf32> to vector<64x64xf32>
      %cst = arith.constant dense<0.000000e+00> : vector<64xf32>
      %4 = vector.multi_reduction <add>, %3, %cst [1] : vector<64x64xf32> to vector<64xf32>
      %5 = vector.shape_cast %4 : vector<64xf32> to vector<64x1xf32>
      %cst_2 = arith.constant 6.400000e+01 : f32
      %6 = vector.broadcast %cst_2 : f32 to vector<64x1xf32>
      %7 = arith.divf %5, %6 : vector<64x1xf32>
      %8 = arith.mulf %3, %3 : vector<64x64xf32>
      %cst_3 = arith.constant dense<0.000000e+00> : vector<64xf32>
      %9 = vector.multi_reduction <add>, %8, %cst_3 [1] : vector<64x64xf32> to vector<64xf32>
      %10 = vector.shape_cast %9 : vector<64xf32> to vector<64x1xf32>
      %cst_4 = arith.constant 6.400000e+01 : f32
      %11 = vector.broadcast %cst_4 : f32 to vector<64x1xf32>
      %12 = arith.divf %10, %11 : vector<64x1xf32>
      %13 = tpu.concatenate %7, %12 in 1 : vector<64x1xf32>, vector<64x1xf32> -> vector<64x2xf32>
      %c0_5 = arith.constant 0 : index
      %c0_6 = arith.constant 0 : index
      %14 = vector.load %arg4[%c0_5, %c0_6] : memref<64x64xf32, #tpu.memory_space<vmem>>, vector<64x64xf32>
      %cst_7 = arith.constant dense<0.000000e+00> : vector<64x2xf32>
      %15 = tpu.matmul %14, %13, %cst_7 {dimension_numbers = #tpu.dot_dimension_numbers<[1], [0], [0], [1], [0, 0, 1, 1], [], []>} : vector<64x64xf32>, vector<64x2xf32>, vector<64x2xf32> -> vector<64x2xf32>
      %16 = vector.extract_strided_slice %15 {offsets = [0, 0], sizes = [64, 1], strides = [1, 1]} : vector<64x2xf32> to vector<64x1xf32>
      %17 = vector.extract_strided_slice %15 {offsets = [0, 1], sizes = [64, 1], strides = [1, 1]} : vector<64x2xf32> to vector<64x1xf32>
      %18 = arith.mulf %16, %16 : vector<64x1xf32>
      %19 = arith.subf %17, %18 : vector<64x1xf32>
      %cst_8 = arith.constant 0.000000e+00 : f32
      %20 = vector.broadcast %cst_8 : f32 to vector<64x1xf32>
      %21 = arith.maximumf %19, %20 : vector<64x1xf32>
      %cst_9 = arith.constant 9.99999997E-7 : f32
      %22 = vector.broadcast %cst_9 : f32 to vector<64x1xf32>
      %23 = arith.addf %21, %22 : vector<64x1xf32>
      %24 = math.rsqrt %23 : vector<64x1xf32>
      %c0_10 = arith.constant 0 : index
      %c0_11 = arith.constant 0 : index
      %25 = vector.load %arg2[%c0_10, %c0_11] : memref<64x1xf32, #tpu.memory_space<vmem>>, vector<64x1xf32>
      %26 = arith.mulf %24, %25 : vector<64x1xf32>
      %c0_12 = arith.constant 0 : index
      %c0_13 = arith.constant 0 : index
      %27 = vector.load %arg3[%c0_12, %c0_13] : memref<64x1xf32, #tpu.memory_space<vmem>>, vector<64x1xf32>
      %28 = arith.mulf %16, %26 : vector<64x1xf32>
      %29 = arith.subf %27, %28 : vector<64x1xf32>
      %30 = vector.broadcast %26 : vector<64x1xf32> to vector<64x64xf32>
      %31 = arith.mulf %3, %30 : vector<64x64xf32>
      %32 = vector.broadcast %29 : vector<64x1xf32> to vector<64x64xf32>
      %33 = arith.addf %31, %32 : vector<64x64xf32>
      %34 = arith.truncf %33 : vector<64x64xf32> to vector<64x64xbf16>
      %c0_14 = arith.constant 0 : index
      %c0_15 = arith.constant 0 : index
      %35 = vector.load %arg5[%c0_14, %c0_15] : memref<512x64xbf16, #tpu.memory_space<vmem>>, vector<512x64xbf16>
      %cst_16 = arith.constant dense<0.000000e+00> : vector<512x64xf32>
      %36 = tpu.matmul %35, %34, %cst_16 {dimension_numbers = #tpu.dot_dimension_numbers<[1], [0], [0], [1], [0, 0, 1, 1], [], []>} : vector<512x64xbf16>, vector<64x64xbf16>, vector<512x64xf32> -> vector<512x64xf32>
      %c0_17 = arith.constant 0 : index
      %c0_18 = arith.constant 0 : index
      %37 = vector.load %arg6[%c0_17, %c0_18] : memref<512x1xf32, #tpu.memory_space<vmem>>, vector<512x1xf32>
      %38 = vector.broadcast %37 : vector<512x1xf32> to vector<512x64xf32>
      %39 = arith.addf %36, %38 : vector<512x64xf32>
      %cst_19 = arith.constant dense<0xFF800000> : vector<64xf32>
      %40 = vector.multi_reduction <maximumf>, %39, %cst_19 [0] : vector<512x64xf32> to vector<64xf32>
      %41 = vector.shape_cast %40 : vector<64xf32> to vector<1x64xf32>
      %42 = vector.broadcast %41 : vector<1x64xf32> to vector<512x64xf32>
      %43 = arith.subf %39, %42 : vector<512x64xf32>
      %44 = math.exp %43 : vector<512x64xf32>
      %45 = arith.truncf %44 : vector<512x64xf32> to vector<512x64xbf16>
      %c0_20 = arith.constant 0 : index
      %c0_21 = arith.constant 0 : index
      %46 = vector.load %arg7[%c0_20, %c0_21] : memref<65x512xbf16, #tpu.memory_space<vmem>>, vector<65x512xbf16>
      %cst_22 = arith.constant dense<0.000000e+00> : vector<65x64xf32>
      %47 = tpu.matmul %46, %45, %cst_22 {dimension_numbers = #tpu.dot_dimension_numbers<[1], [0], [0], [1], [0, 0, 1, 1], [], []>} : vector<65x512xbf16>, vector<512x64xbf16>, vector<65x64xf32> -> vector<65x64xf32>
      %48 = vector.extract_strided_slice %47 {offsets = [0, 0], sizes = [64, 64], strides = [1, 1]} : vector<65x64xf32> to vector<64x64xf32>
      %49 = vector.extract_strided_slice %47 {offsets = [64, 0], sizes = [1, 64], strides = [1, 1]} : vector<65x64xf32> to vector<1x64xf32>
      %50 = tpu.reciprocal %49 {approx = true} : vector<1x64xf32> -> vector<1x64xf32>
      %51 = vector.broadcast %50 : vector<1x64xf32> to vector<64x64xf32>
      %52 = arith.mulf %48, %51 : vector<64x64xf32>
      %c0_23 = arith.constant 0 : index
      %c0_24 = arith.constant 0 : index
      %53 = vector.load %arg8[%c0_23, %c0_24] : memref<64x1xf32, #tpu.memory_space<vmem>>, vector<64x1xf32>
      %54 = vector.broadcast %53 : vector<64x1xf32> to vector<64x64xf32>
      %55 = arith.addf %52, %54 : vector<64x64xf32>
      %56 = arith.index_cast %arg10 : i32 to index
      %c0_25 = arith.constant 0 : index
      %c0_26 = arith.constant 0 : index
      %57 = vector.load %arg1[%56, %c0_25, %c0_26] : memref<4x64x64xf32, #tpu.memory_space<vmem>>, vector<1x64x64xf32>
      %58 = vector.shape_cast %57 : vector<1x64x64xf32> to vector<64x64xf32>
      %59 = arith.addf %55, %58 : vector<64x64xf32>
      %60 = arith.index_cast %arg10 : i32 to index
      %c0_27 = arith.constant 0 : index
      %c0_28 = arith.constant 0 : index
      %61 = vector.load %arg9[%60, %c0_27, %c0_28] : memref<4x64x64xf32, #tpu.memory_space<vmem>>, vector<1x64x64xf32>
      %62 = vector.shape_cast %61 : vector<1x64x64xf32> to vector<64x64xf32>
      %63 = vector.shape_cast %59 : vector<64x64xf32> to vector<1x64x64xf32>
      tpu.vector_store %arg9[%60, %c0_27, %c0_28], %63 {strides = array<i32>} : memref<4x64x64xf32, #tpu.memory_space<vmem>>, vector<1x64x64xf32>,
    }
    %c4_i32_0 = arith.constant 4 : i32
    return
  }
  func.func @transform_0(%arg0: i32) -> (i32, i32, i32) {
    %c0_i32 = arith.constant 0 : i32
    %c0_i32_0 = arith.constant 0 : i32
    %c0_i32_1 = arith.constant 0 : i32
    return %arg0, %c0_i32, %c0_i32_0 : i32, i32, i32
  }
  func.func @transform_1(%arg0: i32) -> (i32, i32) {
    %c0_i32 = arith.constant 0 : i32
    %c0_i32_0 = arith.constant 0 : i32
    %c0_i32_1 = arith.constant 0 : i32
    return %c0_i32, %c0_i32_0 : i32, i32
  }
  func.func @transform_2(%arg0: i32) -> (i32, i32) {
    %c0_i32 = arith.constant 0 : i32
    %c0_i32_0 = arith.constant 0 : i32
    %c0_i32_1 = arith.constant 0 : i32
    return %c0_i32, %c0_i32_0 : i32, i32
  }
  func.func @transform_3(%arg0: i32) -> (i32, i32) {
    %c0_i32 = arith.constant 0 : i32
    %c0_i32_0 = arith.constant 0 : i32
    %c0_i32_1 = arith.constant 0 : i32
    return %c0_i32, %c0_i32_0 : i32, i32
  }
  func.func @transform_4(%arg0: i32) -> (i32, i32) {
    %c0_i32 = arith.constant 0 : i32
    %c0_i32_0 = arith.constant 0 : i32
    %c0_i32_1 = arith.constant 0 : i32
    return %c0_i32, %c0_i32_0 : i32, i32
  }
  func.func @transform_5(%arg0: i32) -> (i32, i32) {
    %c0_i32 = arith.constant 0 : i32
    %c0_i32_0 = arith.constant 0 : i32
    %c0_i32_1 = arith.constant 0 : i32
    return %c0_i32, %c0_i32_0 : i32, i32
  }
  func.func @transform_6(%arg0: i32) -> (i32, i32) {
    %c0_i32 = arith.constant 0 : i32
    %c0_i32_0 = arith.constant 0 : i32
    %c0_i32_1 = arith.constant 0 : i32
    return %c0_i32, %c0_i32_0 : i32, i32
  }
  func.func @transform_7(%arg0: i32) -> (i32, i32) {
    %c0_i32 = arith.constant 0 : i32
    %c0_i32_0 = arith.constant 0 : i32
    %c0_i32_1 = arith.constant 0 : i32
    return %c0_i32, %c0_i32_0 : i32, i32
  }
  func.func @transform_8(%arg0: i32) -> (i32, i32, i32) {
    %c0_i32 = arith.constant 0 : i32
    %c0_i32_0 = arith.constant 0 : i32
    %c0_i32_1 = arith.constant 0 : i32
    return %arg0, %c0_i32, %c0_i32_0 : i32, i32, i32
  }
}

</mosaic_0001>

<bundles_post_ra>
// kernel: tpu_custom_call.1
= control target key start
LH: loop header
LB: loop body
LE: loop exit
PB: predicated region body
PF: predicated region fallthrough
CT: control target
= control target key end

     0   :  { %13 = vsyncpa [#allocation3], 0  ;;  %s2922_s27 = smov 0   ;;  %s4276_s0 = inlined_call_operand.vmem [shape: f32[4,64,64], index: 0, kind: input, shape index: {}]   ;;  %s4277_s1 = inlined_call_operand.vmem [shape: f32[64,1], index: 1, kind: input, shape index: {}]   ;;  %s4278_s2 = inlined_call_operand.vmem [shape: f32[64,1], index: 2, kind: input, shape index: {}]   ;;  %s4279_s3 = inlined_call_operand.vmem [shape: f32[64,64], index: 3, kind: input, shape index: {}]   ;;  %s4280_s4 = inlined_call_operand.vmem [shape: bf16[512,64], index: 4, kind: input, shape index: {}]   ;;  %s4281_s5 = inlined_call_operand.vmem [shape: f32[512,1], index: 5, kind: input, shape index: {}]   ;;  %s4282_s6 = inlined_call_operand.vmem [shape: bf16[65,512], index: 6, kind: input, shape index: {}]   ;;  %s4283_s7 = inlined_call_operand.vmem [shape: f32[64,1], index: 7, kind: input, shape index: {}]   ;;  %s4284_s8 = inlined_call_operand.hbm [shape: f32[4,64,64], index: 8, kind: output, shape index: {}]  }
   0x1 LB: > { %vm47_vm0 = vcmask 523264   ;;  %s2252_s28 = sshll.u32 %s2868_s27, 6  ;;  %v130_v32 = vld [vmem:[%s4279_s3] sm:$0xff]  ;;  %vm121_vm1 = vcmask 7168   ;;  %s2870_s26 = smov 1   ;;  %s2868_s27 = sphi %s2922_s27, %s36_s27  }
   0x2   : > { %s2933_s9 = scalar_lea.vmem %s4276_s0, %s2252_s28  ;;  %2505 = vmatprep.mubr.msk.f32.mxu0 %vm47_vm0, %v130_v32  ;;  %s2872_s24 = smov 127  }
   0x3   : > { %v2936_v0 = vld [vmem:[%s2933_s9 + $0x18] sm:$0xff]  ;;  %v2939_v1 = vld [vmem:[%s2933_s9] sm:$0xff]  ;;  %v2942_v2 = vld [vmem:[%s2933_s9 + $0x8] sm:$0xff]  ;;  %s2218_s19 = scalar_lea.vmem [#allocation2], %s2252_s28  ;;  %s36_s27 = sadd.s32 1, %s2868_s27  }
   0x4   : > { %v57_v3 = vsel %vm47_vm0, %v2936_v0, 0.0  ;;  %v48_v4 = vsel %vm47_vm0, %v2939_v1, 0.0  ;;  %v81_v5 = vmul.f32 %v2939_v1, %v2939_v1  ;;  %v2951_v6 = vld [vmem:[%s2933_s9 + $0x10] sm:$0xff]  ;;  %v2954_v7 = vld [vmem:[%s2933_s9 + $0x28] sm:$0xff]  ;;  %v2957_v8 = vld [vmem:[%s2933_s9 + $0x20] sm:$0xff]  ;;  %v82_v9 = vmul.f32 %v2942_v2, %v2942_v2  ;;  %p33_p0 = scmp.ge.s32.totalorder %s36_s27, 4  }
   0x5   : > { %58 = vadd.xlane.f32.xlu1 %v57_v3  ;;  %49 = vadd.xlane.f32.xlu0 %v48_v4  ;;  %v84_v10 = vmul.f32 %v2936_v0, %v2936_v0  ;;  %v83_v11 = vmul.f32 %v2951_v6, %v2951_v6  ;;  %v51_v13 = vsel %vm47_vm0, %v2942_v2, 0.0  ;;  %v54_v14 = vsel %vm47_vm0, %v2951_v6, 0.0  ;;  %v2979_v19 = vld [vmem:[%s2933_s9 + $0x38] sm:$0xff]  ;;  %v2989_v26 = vld [vmem:[%s2933_s9 + $0x30] sm:$0xff]  ;;  %s2874_s28 = smov (%p33_p0), [#allocation2]  }
   0x6   : > { %v89_v12 = vsel %vm47_vm0, %v81_v5, 0.0  ;;  %v86_v15 = vmul.f32 %v2954_v7, %v2954_v7  ;;  %v63_v16 = vsel %vm47_vm0, %v2954_v7, 0.0  ;;  %v60_v17 = vsel %vm47_vm0, %v2957_v8, 0.0 }
   0x7   : > { %v85_v18 = vmul.f32 %v2957_v8, %v2957_v8  ;;  %v92_v20 = vsel %vm47_vm0, %v82_v9, 0.0  ;;  %v98_v21 = vsel %vm47_vm0, %v84_v10, 0.0  ;;  %v95_v22 = vsel %vm47_vm0, %v83_v11, 0.0 }
   0x8   : > { %v104_v23 = vsel %vm47_vm0, %v86_v15, 0.0  ;;  %v69_v24 = vsel %vm47_vm0, %v2979_v19, 0.0  ;;  %v66_v27 = vsel %vm47_vm0, %v2989_v26, 0.0  ;;  %v88_v28 = vmul.f32 %v2979_v19, %v2979_v19 }
   0x9   : > { %90 = vadd.xlane.f32.xlu1 %v89_v12  ;;  %52 = vadd.xlane.f32.xlu0 %v51_v13  ;;  %v101_v25 = vsel %vm47_vm0, %v85_v18, 0.0  ;;  %v87_v29 = vmul.f32 %v2989_v26, %v2989_v26 }
   0xa   : > { %v110_v30 = vsel %vm47_vm0, %v88_v28, 0.0 }
   0xb   : > { %v107_v31 = vsel %vm47_vm0, %v87_v29, 0.0 }
   0xd   : > { %93 = vadd.xlane.f32.xlu1 %v92_v20  ;;  %55 = vadd.xlane.f32.xlu0 %v54_v14  ;;  %v131_v20 = vld [vmem:[%s4279_s3 + $0x8] sm:$0xff] }
  0x11   : > { %99 = vadd.xlane.f32.xlu1 %v98_v21  ;;  %96 = vadd.xlane.f32.xlu0 %v95_v22  ;;  %v132_v21 = vld [vmem:[%s4279_s3 + $0x10] sm:$0xff]  ;;  %v133_v22 = vld [vmem:[%s4279_s3 + $0x18] sm:$0xff] }
  0x15   : > { %64 = vadd.xlane.f32.xlu1 %v63_v16  ;;  %61 = vadd.xlane.f32.xlu0 %v60_v17 }
  0x19   : > { %105 = vadd.xlane.f32.xlu1 %v104_v23  ;;  %102 = vadd.xlane.f32.xlu0 %v101_v25  ;;  %v134_v23 = vld [vmem:[%s4279_s3 + $0x20] sm:$0xff]  ;;  %v136_v25 = vld [vmem:[%s4279_s3 + $0x30] sm:$0xff] }
  0x1d   : > { %70 = vadd.xlane.f32.xlu1 %v69_v24  ;;  %67 = vadd.xlane.f32.xlu0 %v66_v27  ;;  %v135_v24 = vld [vmem:[%s4279_s3 + $0x28] sm:$0xff]  ;;  %v137_v27 = vld [vmem:[%s4279_s3 + $0x38] sm:$0xff] }
  0x21   : > { %111 = vadd.xlane.f32.xlu1 %v110_v30  ;;  %108 = vadd.xlane.f32.xlu0 %v107_v31 }
  0x92   : > { %v59_v33 = vpop.xlane.xlu1 %58  ;;  %v50_v34 = vpop.xlane.xlu0 %49 }
  0x93   : > { %v73_v40 = vmul.f32 0.015625, %v50_v34  ;;  %v76_v48 = vmul.f32 0.015625, %v59_v33 }
  0x96   : > { %v91_v35 = vpop.xlane.xlu1 %90  ;;  %v53_v36 = vpop.xlane.xlu0 %52 }
  0x97   : > { %v113_v37 = vmul.f32 0.015625, %v91_v35  ;;  %v74_v41 = vmul.f32 0.015625, %v53_v36 }
  0x99   : > { %v122_v43 = vsel %vm121_vm1, %v73_v40, %v113_v37 }
  0x9a   : > { %v94_v38 = vpop.xlane.xlu1 %93  ;;  %v56_v39 = vpop.xlane.xlu0 %55 }
  0x9b   : > { %v114_v42 = vmul.f32 0.015625, %v94_v38  ;;  %v75_v49 = vmul.f32 0.015625, %v56_v39 }
  0x9d   : > { %v123_v44 = vsel %vm121_vm1, %v74_v41, %v114_v42 }
  0x9e   : > { %v100_v45 = vpop.xlane.xlu1 %99  ;;  %v97_v46 = vpop.xlane.xlu0 %96  ;;  %v2589_v47 = vpack.c.bf16 %v123_v44, %v122_v43  ;;  %v339_v44 = vld [vmem:[%s4277_s1] sm:$0xff] }
  0x9f   : > { %v116_v50 = vmul.f32 0.015625, %v100_v45  ;;  %v115_v51 = vmul.f32 0.015625, %v97_v46  ;;  %v340_v45 = vld [vmem:[%s4277_s1 + $0x8] sm:$0xff]  ;;  %v341_v46 = vld [vmem:[%s4277_s1 + $0x10] sm:$0xff] }
  0xa0   : > { %2590 = vmatprep.subr.bf16.mxu0 %v2589_v47 }
  0xa1   : > { %2592 = vmatpush3.bf16.msra.mxu0 %v2589_v47  ;;  %v124_v52 = vsel %vm121_vm1, %v75_v49, %v115_v51  ;;  %v125_v53 = vsel %vm121_vm1, %v76_v48, %v116_v50  ;;  %v342_v47 = vld [vmem:[%s4277_s1 + $0x18] sm:$0xff]  ;;  %v343_v48 = vld [vmem:[%s4277_s1 + $0x20] sm:$0xff]  ;;  %v2871_v49 = vmov 1   ;;  %v344_v50 = vld [vmem:[%s4277_s1 + $0x28] sm:$0xff] }
  0xa2   : > { %v65_v54 = vpop.xlane.xlu1 %64  ;;  %v62_v55 = vpop.xlane.xlu0 %61  ;;  %v2593_v56 = vpack.c.bf16 %v125_v53, %v124_v52  ;;  %2621 = vset.pattern.permute.xlu1 %v2871_v49  ;;  %2620 = vset.pattern.permute.xlu0 %v2871_v49  ;;  %v345_v51 = vld [vmem:[%s4277_s1 + $0x30] sm:$0xff]  ;;  %v346_v52 = vld [vmem:[%s4277_s1 + $0x38] sm:$0xff] }
  0xa3   : > { %v78_v59 = vmul.f32 0.015625, %v65_v54  ;;  %v77_v60 = vmul.f32 0.015625, %v62_v55 }
  0xa4   : > { %2594 = vmatprep.subr.bf16.mxu0 %v2593_v56 }
  0xa5   : > { %2596 = vmatpush3.bf16.msra.mxu0 %v2593_v56 }
  0xa6   : > { %v106_v57 = vpop.xlane.xlu1 %105  ;;  %v103_v58 = vpop.xlane.xlu0 %102 }
  0xa7   : > { %v118_v61 = vmul.f32 0.015625, %v106_v57  ;;  %v117_v62 = vmul.f32 0.015625, %v103_v58 }
  0xa9   : > { %v126_v63 = vsel %vm121_vm1, %v77_v60, %v117_v62  ;;  %v127_v3 = vsel %vm121_vm1, %v78_v59, %v118_v61 }
  0xaa   : > { %v71_v4 = vpop.xlane.xlu1 %70  ;;  %v68_v5 = vpop.xlane.xlu0 %67  ;;  %v2597_v9 = vpack.c.bf16 %v127_v3, %v126_v63 }
  0xab   : > { %v80_v12 = vmul.f32 0.015625, %v71_v4  ;;  %v79_v13 = vmul.f32 0.015625, %v68_v5 }
  0xac   : > { %2598 = vmatprep.subr.bf16.mxu0 %v2597_v9 }
  0xad   : > { %2600 = vmatpush3.bf16.msra.mxu0 %v2597_v9 }
  0xae   : > { %v112_v10 = vpop.xlane.xlu1 %111  ;;  %v109_v11 = vpop.xlane.xlu0 %108 }
  0xaf   : > { %v120_v14 = vmul.f32 0.015625, %v112_v10  ;;  %v119_v15 = vmul.f32 0.015625, %v109_v11 }
  0xb1   : > { %v128_v16 = vsel %vm121_vm1, %v79_v13, %v119_v15  ;;  %v129_v17 = vsel %vm121_vm1, %v80_v12, %v120_v14 }
  0xb2   : > { %v2601_v18 = vpack.c.bf16 %v129_v17, %v128_v16 }
  0xb4   : > { %2602 = vmatprep.subr.bf16.mxu0 %v2601_v18 }
  0xb5   : > { %2604 = vmatpush3.bf16.msra.mxu0 %v2601_v18 }
  0xb8   : > { %2506 = vmatmul.mubr.msk.f32.vlgmr.msra.gmra.mrb[0].mxu0 %vm47_vm0, %v131_v20 }
  0xb9   : > { %2508 = vmatprep.mubr.msk.f32.mxu0 %vm47_vm0, %v132_v21 }
  0xbc   : > { %2509 = vmatmul.mubr.msk.f32.gmra.mrb[2].mxu0 %vm47_vm0, %v133_v22 }
  0xbd   : > { %2511 = vmatprep.mubr.msk.f32.mxu0 %vm47_vm0, %v134_v23 }
  0xc0   : > { %2512 = vmatmul.mubr.msk.f32.gmra.mrb[4].mxu0 %vm47_vm0, %v135_v24 }
  0xc1   : > { %2514 = vmatprep.mubr.msk.f32.mxu0 %vm47_vm0, %v136_v25 }
  0xc4   : > { %2515 = vmatmul.mubr.msk.f32.gmra.mrb[6].mxu0 %vm47_vm0, %v137_v27 }
 0x18b   : > { %v3039_v28 = vpop.f32.mrb[0].mxu0 }
 0x18c   : > { %v268_v29 = vmul.f32 %v3039_v28, %v3039_v28  ;;  %v3043_v30 = vpop.f32.mrb[1].mxu0 }
 0x18d   : > { %v267_v31 = vmul.f32 %v3043_v30, %v3043_v30 }
 0x18e   : > { %285 = vrot.lane.b32.xlu1 %v268_v29, %s2870_s26 }
 0x18f   : > { %283 = vrot.lane.b32.xlu0 %v267_v31, %s2870_s26  ;;  %v3049_v32 = vpop.f32.mrb[2].mxu0 }
 0x190   : > { %v270_v33 = vmul.f32 %v3049_v32, %v3049_v32  ;;  %v3053_v34 = vpop.f32.mrb[3].mxu0 }
 0x191   : > { %v269_v36 = vmul.f32 %v3053_v34, %v3053_v34 }
 0x192   : > { %289 = vrot.lane.b32.xlu1 %v270_v33, %s2870_s26 }
 0x193   : > { %v3056_v35 = vpop.f32.mrb[4].mxu0 }
 0x194   : > { %v3060_v37 = vpop.f32.mrb[5].mxu0  ;;  %v272_v39 = vmul.f32 %v3056_v35, %v3056_v35 }
 0x195   : > { %v271_v38 = vmul.f32 %v3060_v37, %v3060_v37 }
 0x196   : > { %287 = vrot.lane.b32.xlu1 %v269_v36, %s2870_s26 }
 0x197   : > { %291 = vrot.lane.b32.xlu0 %v271_v38, %s2870_s26  ;;  %v3068_v40 = vpop.f32.mrb[6].mxu0 }
 0x198   : > { %v3070_v41 = vpop.f32.mrb[7].mxu0  ;;  %v274_v43 = vmul.f32 %v3068_v40, %v3068_v40 }
 0x199   : > { %v273_v42 = vmul.f32 %v3070_v41, %v3070_v41 }
 0x19a   : > { %293 = vrot.lane.b32.xlu1 %v272_v39, %s2870_s26 }
 0x19b   : > { %295 = vrot.lane.b32.xlu0 %v273_v42, %s2870_s26 }
 0x19e   : > { %297 = vrot.lane.b32.xlu1 %v274_v43, %s2870_s26 }
 0x19f   : > { %355 = vrot.lane.b32.xlu0 %v339_v44, %s2870_s26 }
 0x1a2   : > { %357 = vrot.lane.b32.xlu1 %v340_v45, %s2870_s26 }
 0x1a3   : > { %359 = vrot.lane.b32.xlu0 %v341_v46, %s2870_s26 }
 0x1a6   : > { %361 = vrot.lane.b32.xlu1 %v342_v47, %s2870_s26 }
 0x1a7   : > { %363 = vrot.lane.b32.xlu0 %v343_v48, %s2870_s26 }
 0x1aa   : > { %365 = vrot.lane.b32.xlu1 %v344_v50, %s2870_s26 }
 0x1ab   : > { %367 = vrot.lane.b32.xlu0 %v345_v51, %s2870_s26 }
 0x1ae   : > { %369 = vrot.lane.b32.xlu1 %v346_v52, %s2870_s26 }
 0x200   : > { %v286_v53 = vpop.permute.xlu1 %285 }
 0x201   : > { %v308_v54 = vsub.f32 %v3039_v28, %v286_v53  ;;  %v284_v55 = vpop.permute.xlu0 %283 }
 0x202   : > { %v307_v56 = vsub.f32 %v3043_v30, %v284_v55 }
 0x203   : > { %v316_v57 = vmax.f32 %v308_v54, 0.0 }
 0x204   : > { %v315_v58 = vmax.f32 %v307_v56, 0.0  ;;  %v290_v59 = vpop.permute.xlu1 %289 }
 0x205   : > { %v310_v60 = vsub.f32 %v3049_v32, %v290_v59  ;;  %v324_v61 = vadd.f32 1e-06, %v316_v57 }
 0x206   : > { %v323_v62 = vadd.f32 1e-06, %v315_v58 }
 0x207   : > { %v318_v63 = vmax.f32 %v310_v60, 0.0 }
 0x208   : > { %2684 = vrsqrt.f32 %v323_v62  ;;  %v288_v3 = vpop.permute.xlu1 %287  ;;  %v387_v62 = vld [vmem:[%s4278_s2] sm:$0xff] }
 0x209   : > { %v309_v4 = vsub.f32 %v3053_v34, %v288_v3  ;;  %v292_v5 = vpop.permute.xlu0 %291  ;;  %2686 = vrsqrt.f32 %v324_v61  ;;  %v326_v9 = vadd.f32 1e-06, %v318_v63  ;;  %v2873_v61 = vmov 0  }
 0x20a   : > { %v311_v10 = vsub.f32 %v3060_v37, %v292_v5 }
 0x20b   : > { %v317_v11 = vmax.f32 %v309_v4, 0.0  ;;  %2688 = vrsqrt.f32 %v326_v9  ;;  %v388_v4 = vld [vmem:[%s4278_s2 + $0x8] sm:$0xff] }
 0x20c   : > { %v319_v12 = vmax.f32 %v311_v10, 0.0  ;;  %v294_v13 = vpop.permute.xlu1 %293 }
 0x20d   : > { %v325_v14 = vadd.f32 1e-06, %v317_v11  ;;  %v312_v15 = vsub.f32 %v3056_v35, %v294_v13  ;;  %v296_v16 = vpop.permute.xlu0 %295 }
 0x20e   : > { %v327_v17 = vadd.f32 1e-06, %v319_v12  ;;  %v313_v18 = vsub.f32 %v3070_v41, %v296_v16  ;;  %v390_v12 = vld [vmem:[%s4278_s2 + $0x18] sm:$0xff] }
 0x20f   : > { %2690 = vrsqrt.f32 %v325_v14  ;;  %v320_v20 = vmax.f32 %v312_v15, 0.0 }
 0x210   : > { %v321_v21 = vmax.f32 %v313_v18, 0.0  ;;  %v298_v22 = vpop.permute.xlu1 %297  ;;  %2692 = vrsqrt.f32 %v327_v17 }
 0x211   : > { %v328_v23 = vadd.f32 1e-06, %v320_v20  ;;  %v314_v24 = vsub.f32 %v3068_v40, %v298_v22  ;;  %v356_v25 = vpop.permute.xlu0 %355 }
 0x212   : > { %v2685_v27 = vpop.eup %2684  ;;  %v329_v29 = vadd.f32 1e-06, %v321_v21 }
 0x213   : > { %2694 = vrsqrt.f32 %v328_v23  ;;  %v322_v31 = vmax.f32 %v314_v24, 0.0  ;;  %v379_v33 = vmul.f32 %v2685_v27, %v356_v25  ;;  %v2687_v36 = vpop.eup %2686  ;;  %v394_v25 = vld [vmem:[%s4278_s2 + $0x38] sm:$0xff] }
 0x214   : > { %v358_v38 = vpop.permute.xlu1 %357  ;;  %2696 = vrsqrt.f32 %v329_v29  ;;  %v393_v29 = vld [vmem:[%s4278_s2 + $0x30] sm:$0xff] }
 0x215   : > { %v330_v39 = vadd.f32 1e-06, %v322_v31  ;;  %v380_v42 = vmul.f32 %v2687_v36, %v358_v38  ;;  %403 = vrot.lane.b32.xlu0 %v379_v33, %s2872_s24  ;;  %v360_v43 = vpop.permute.xlu0 %359  ;;  %v2689_v44 = vpop.eup %2688  ;;  %v600_v38 = vld [vmem:[%s4281_s5 + $0x8] sm:$0xff] }
 0x217   : > { %2698 = vrsqrt.f32 %v330_v39  ;;  %405 = vrot.lane.b32.xlu1 %v380_v42, %s2872_s24  ;;  %v599_v39 = vld [vmem:[%s4281_s5] sm:$0xff] }
 0x218   : > { %v362_v45 = vpop.permute.xlu1 %361 }
 0x219   : > { %v2691_v46 = vpop.eup %2690  ;;  %v382_v47 = vmul.f32 %v2689_v44, %v362_v45  ;;  %v364_v48 = vpop.permute.xlu0 %363  ;;  %v603_v44 = vld [vmem:[%s4281_s5 + $0x20] sm:$0xff]  ;;  %v606_v45 = vld [vmem:[%s4281_s5 + $0x38] sm:$0xff] }
 0x21a   : > { %v381_v49 = vmul.f32 %v2691_v46, %v360_v43  ;;  %v2693_v50 = vpop.eup %2692  ;;  %v604_v43 = vld [vmem:[%s4281_s5 + $0x28] sm:$0xff]  ;;  %v605_v46 = vld [vmem:[%s4281_s5 + $0x30] sm:$0xff] }
 0x21b   : > { %409 = vrot.lane.b32.xlu1 %v382_v47, %s2872_s24  ;;  %v383_v53 = vmul.f32 %v2693_v50, %v364_v48  ;;  %v607_v48 = vld [vmem:[%s4281_s5 + $0x40] sm:$0xff]  ;;  %v609_v50 = vld [vmem:[%s4281_s5 + $0x50] sm:$0xff] }
 0x21c   : > { %407 = vrot.lane.b32.xlu0 %v381_v49, %s2872_s24  ;;  %v366_v51 = vpop.permute.xlu1 %365 }
 0x21d   : > { %v2695_v52 = vpop.eup %2694  ;;  %v368_v56 = vpop.permute.xlu0 %367 }
 0x21e   : > { %v384_v54 = vmul.f32 %v2695_v52, %v366_v51  ;;  %v2697_v55 = vpop.eup %2696  ;;  %v612_v51 = vld [vmem:[%s4281_s5 + $0x68] sm:$0xff]  ;;  %v611_v52 = vld [vmem:[%s4281_s5 + $0x60] sm:$0xff] }
 0x21f   : > { %v385_v59 = vmul.f32 %v2697_v55, %v368_v56  ;;  %v616_v55 = vld [vmem:[%s4281_s5 + $0x88] sm:$0xff]  ;;  %v615_v56 = vld [vmem:[%s4281_s5 + $0x80] sm:$0xff] }
 0x220   : > { %413 = vrot.lane.b32.xlu1 %v384_v54, %s2872_s24  ;;  %411 = vrot.lane.b32.xlu0 %v383_v53, %s2872_s24  ;;  %v370_v57 = vpop.permute.xlu1 %369 }
 0x221   : > { %v2699_v58 = vpop.eup %2698 }
 0x222   : > { %v386_v60 = vmul.f32 %v2699_v58, %v370_v57  ;;  %v618_v57 = vld [vmem:[%s4281_s5 + $0x98] sm:$0xff]  ;;  %v617_v58 = vld [vmem:[%s4281_s5 + $0x90] sm:$0xff] }
 0x224   : > { %417 = vrot.lane.b32.xlu1 %v386_v60, %s2872_s24  ;;  %415 = vrot.lane.b32.xlu0 %v385_v59, %s2872_s24 }
 0x228   : > { %448 = vperm.xlu1 %2621, %v380_v42   ;;  %444 = vperm.xlu0 %2620, %v379_v33   ;;  %v2624_v42 = vld [vmem:[%s4280_s4] sm:$0xff]  }
 0x229   : > { %2525 = vmatprep.mubr.msk.bf16.mxu1 %vm47_vm0, %v2624_v42  ;;  %v651_v42 = vld [vmem:[%s4281_s5 + $0x1a0] sm:$0xff] }
 0x22c   : > { %452 = vperm.xlu1 %2621, %v381_v49   ;;  %460 = vperm.xlu0 %2620, %v383_v53   ;;  %v610_v49 = vld [vmem:[%s4281_s5 + $0x58] sm:$0xff] }
 0x22d   : > { %v614_v53 = vld [vmem:[%s4281_s5 + $0x78] sm:$0xff] }
 0x230   : > { %456 = vperm.xlu1 %2621, %v382_v47   ;;  %2622 = vset.pattern.permute.xlu0 %v2873_v61  ;;  %v608_v47 = vld [vmem:[%s4281_s5 + $0x48] sm:$0xff] }
 0x234   : > { %464 = vperm.xlu1 %2621, %v384_v54   ;;  %v613_v54 = vld [vmem:[%s4281_s5 + $0x70] sm:$0xff] }
 0x238   : > { %472 = vperm.xlu1 %2621, %v386_v60   ;;  %v619_v60 = vld [vmem:[%s4281_s5 + $0xa0] sm:$0xff] }
 0x23c   : > { %468 = vperm.xlu1 %2621, %v385_v59   ;;  %v620_v59 = vld [vmem:[%s4281_s5 + $0xa8] sm:$0xff] }
 0x240   : > { %2623 = vset.pattern.permute.xlu1 %v2873_v61  ;;  %v622_v61 = vld [vmem:[%s4281_s5 + $0xb8] sm:$0xff] }
 0x287   : > { %v404_v63 = vpop.permute.xlu0 %403 }
 0x288   : > { %v427_v3 = vmul.f32 %v404_v63, %v3043_v30  ;;  %v389_v30 = vld [vmem:[%s4278_s2 + $0x10] sm:$0xff]  ;;  %v624_v63 = vld [vmem:[%s4281_s5 + $0xc8] sm:$0xff] }
 0x289   : > { %v406_v5 = vpop.permute.xlu1 %405 }
 0x28a   : > { %v435_v9 = vsub.f32 %v387_v62, %v427_v3  ;;  %v428_v10 = vmul.f32 %v3039_v28, %v406_v5  ;;  %v392_v28 = vld [vmem:[%s4278_s2 + $0x28] sm:$0xff]  ;;  %v621_v62 = vld [vmem:[%s4281_s5 + $0xb0] sm:$0xff]  ;;  %v623_v3 = vld [vmem:[%s4281_s5 + $0xc0] sm:$0xff] }
 0x28b   : > { %v625_v5 = vld [vmem:[%s4281_s5 + $0xd0] sm:$0xff] }
 0x28c   : > { %v436_v11 = vsub.f32 %v388_v4, %v428_v10  ;;  %485 = vperm.xlu1 %2623, %v435_v9   ;;  %v626_v4 = vld [vmem:[%s4281_s5 + $0xd8] sm:$0xff]  ;;  %v628_v9 = vld [vmem:[%s4281_s5 + $0xe8] sm:$0xff]  ;;  %v627_v10 = vld [vmem:[%s4281_s5 + $0xe0] sm:$0xff] }
 0x28d   : > { %v410_v13 = vpop.permute.xlu1 %409 }
 0x28e   : > { %v430_v14 = vmul.f32 %v3049_v32, %v410_v13  ;;  %490 = vperm.xlu0 %2622, %v436_v11   ;;  %v408_v15 = vpop.permute.xlu0 %407  ;;  %v391_v32 = vld [vmem:[%s4278_s2 + $0x20] sm:$0xff]  ;;  %v630_v11 = vld [vmem:[%s4281_s5 + $0xf8] sm:$0xff]  ;;  %v632_v13 = vld [vmem:[%s4281_s5 + $0x108] sm:$0xff] }
 0x28f   : > { %v429_v16 = vmul.f32 %v408_v15, %v3053_v34  ;;  %v633_v15 = vld [vmem:[%s4281_s5 + $0x110] sm:$0xff] }
 0x290   : > { %v438_v17 = vsub.f32 %v390_v12, %v430_v14  ;;  %v629_v12 = vld [vmem:[%s4281_s5 + $0xf0] sm:$0xff]  ;;  %v631_v14 = vld [vmem:[%s4281_s5 + $0x100] sm:$0xff] }
 0x291   : > { %v437_v18 = vsub.f32 %v389_v30, %v429_v16  ;;  %v634_v30 = vld [vmem:[%s4281_s5 + $0x118] sm:$0xff]  ;;  %v636_v16 = vld [vmem:[%s4281_s5 + $0x128] sm:$0xff] }
 0x292   : > { %v414_v20 = vpop.permute.xlu1 %413  ;;  %500 = vperm.xlu1 %2623, %v438_v17   ;;  %v412_v21 = vpop.permute.xlu0 %411  ;;  %v635_v17 = vld [vmem:[%s4281_s5 + $0x120] sm:$0xff] }
 0x293   : > { %v432_v22 = vmul.f32 %v3056_v35, %v414_v20  ;;  %v431_v23 = vmul.f32 %v412_v21, %v3060_v37  ;;  %495 = vperm.xlu0 %2622, %v437_v18   ;;  %v638_v18 = vld [vmem:[%s4281_s5 + $0x138] sm:$0xff]  ;;  %v639_v21 = vld [vmem:[%s4281_s5 + $0x140] sm:$0xff] }
 0x295   : > { %v440_v24 = vsub.f32 %v392_v28, %v432_v22  ;;  %v439_v34 = vsub.f32 %v391_v32, %v431_v23  ;;  %v637_v28 = vld [vmem:[%s4281_s5 + $0x130] sm:$0xff]  ;;  %v640_v32 = vld [vmem:[%s4281_s5 + $0x148] sm:$0xff]  ;;  %v642_v23 = vld [vmem:[%s4281_s5 + $0x158] sm:$0xff] }
 0x296   : > { %v418_v27 = vpop.permute.xlu1 %417  ;;  %v416_v31 = vpop.permute.xlu0 %415 }
 0x297   : > { %v434_v33 = vmul.f32 %v3068_v40, %v418_v27  ;;  %v433_v36 = vmul.f32 %v416_v31, %v3070_v41  ;;  %510 = vperm.xlu0 %2622, %v440_v24   ;;  %505 = vperm.xlu1 %2623, %v439_v34   ;;  %v602_v40 = vld [vmem:[%s4281_s5 + $0x18] sm:$0xff]  ;;  %v601_v41 = vld [vmem:[%s4281_s5 + $0x10] sm:$0xff]  ;;  %v644_v34 = vld [vmem:[%s4281_s5 + $0x168] sm:$0xff] }
 0x298   : > { %v641_v24 = vld [vmem:[%s4281_s5 + $0x150] sm:$0xff] }
 0x299   : > { %v442_v35 = vsub.f32 %v394_v25, %v434_v33  ;;  %v441_v37 = vsub.f32 %v393_v29, %v433_v36  ;;  %v643_v25 = vld [vmem:[%s4281_s5 + $0x160] sm:$0xff]  ;;  %v646_v29 = vld [vmem:[%s4281_s5 + $0x178] sm:$0xff]  ;;  %v645_v31 = vld [vmem:[%s4281_s5 + $0x170] sm:$0xff] }
 0x29a   : > { %v648_v36 = vld [vmem:[%s4281_s5 + $0x188] sm:$0xff] }
 0x29b   : > { %520 = vperm.xlu1 %2623, %v442_v35   ;;  %515 = vperm.xlu0 %2622, %v441_v37   ;;  %v647_v35 = vld [vmem:[%s4281_s5 + $0x180] sm:$0xff]  ;;  %v650_v37 = vld [vmem:[%s4281_s5 + $0x198] sm:$0xff] }
 0x29f   : > { %670 = vperm.xlu1 %2623, %v600_v38   ;;  %665 = vperm.xlu0 %2622, %v599_v39   ;;  %v649_v38 = vld [vmem:[%s4281_s5 + $0x190] sm:$0xff] }
 0x2a3   : > { %680 = vperm.xlu1 %2623, %v602_v40   ;;  %675 = vperm.xlu0 %2622, %v601_v41   ;;  %v652_v41 = vld [vmem:[%s4281_s5 + $0x1a8] sm:$0xff] }
 0x2a7   : > { %690 = vperm.xlu1 %2623, %v604_v43   ;;  %685 = vperm.xlu0 %2622, %v603_v44   ;;  %v449_v20 = vpop.permute.xlu1 %448  ;;  %v445_v40 = vpop.permute.xlu0 %444  ;;  %v654_v44 = vld [vmem:[%s4281_s5 + $0x1b8] sm:$0xff] }
 0x2ab   : > { %700 = vperm.xlu1 %2623, %v606_v45   ;;  %695 = vperm.xlu0 %2622, %v605_v46   ;;  %v453_v22 = vpop.permute.xlu1 %452  ;;  %v653_v45 = vld [vmem:[%s4281_s5 + $0x1b0] sm:$0xff]  ;;  %v461_v46 = vpop.permute.xlu0 %460 }
 0x2af   : > { %710 = vperm.xlu1 %2623, %v608_v47   ;;  %705 = vperm.xlu0 %2622, %v607_v48   ;;  %v457_v27 = vpop.permute.xlu1 %456  ;;  %v476_v48 = vmul.f32 %v449_v20, %v2942_v2  ;;  %v657_v2 = vld [vmem:[%s4281_s5 + $0x1d0] sm:$0xff]  ;;  %v2625_v20 = vld [vmem:[%s4280_s4 + $0x8] sm:$0xff]  }
 0x2b3   : > { %720 = vperm.xlu1 %2623, %v610_v49   ;;  %715 = vperm.xlu0 %2622, %v609_v50   ;;  %v465_v33 = vpop.permute.xlu1 %464  ;;  %v475_v49 = vmul.f32 %v445_v40, %v2939_v1  ;;  %v656_v50 = vld [vmem:[%s4281_s5 + $0x1c8] sm:$0xff]  ;;  %v658_v1 = vld [vmem:[%s4281_s5 + $0x1d8] sm:$0xff]  ;;  %v2638_v40 = vld [vmem:[%s4280_s4 + $0x70] sm:$0xff]  }
 0x2b7   : > { %730 = vperm.xlu1 %2623, %v612_v51   ;;  %725 = vperm.xlu0 %2622, %v611_v52   ;;  %v473_v39 = vpop.permute.xlu1 %472  ;;  %v655_v51 = vld [vmem:[%s4281_s5 + $0x1c0] sm:$0xff] }
 0x2bb   : > { %740 = vperm.xlu1 %2623, %v614_v53   ;;  %735 = vperm.xlu0 %2622, %v613_v54   ;;  %v469_v43 = vpop.permute.xlu1 %468 }
 0x2bf   : > { %750 = vperm.xlu1 %2623, %v616_v55   ;;  %745 = vperm.xlu0 %2622, %v615_v56   ;;  %v478_v55 = vmul.f32 %v457_v27, %v2936_v0  ;;  %v660_v0 = vld [vmem:[%s4281_s5 + $0x1e8] sm:$0xff] }
 0x2c0   : > { %v2629_v27 = vld [vmem:[%s4280_s4 + $0x28] sm:$0xff]  }
 0x2c3   : > { %760 = vperm.xlu1 %2623, %v618_v57   ;;  %755 = vperm.xlu0 %2622, %v617_v58   ;;  %v477_v57 = vmul.f32 %v453_v22, %v2951_v6  ;;  %v480_v6 = vmul.f32 %v465_v33, %v2954_v7  ;;  %v481_v7 = vmul.f32 %v469_v43, %v2989_v26  ;;  %v2157_v26 = vld [vmem:[%s4283_s7 + $0x18] sm:$0xff]  ;;  %v2158_v22 = vld [vmem:[%s4283_s7 + $0x20] sm:$0xff]  ;;  %v2641_v43 = vld [vmem:[%s4280_s4 + $0x88] sm:$0xff]  }
 0x2c4   : > { %v2632_v33 = vld [vmem:[%s4280_s4 + $0x40] sm:$0xff]  }
 0x2c7   : > { %770 = vperm.xlu1 %2623, %v620_v59   ;;  %765 = vperm.xlu0 %2622, %v619_v60  }
 0x2cb   : > { %780 = vperm.xlu1 %2623, %v622_v61   ;;  %775 = vperm.xlu0 %2622, %v621_v62   ;;  %v659_v62 = vld [vmem:[%s4281_s5 + $0x1e0] sm:$0xff] }
 0x2cf   : > { %790 = vperm.xlu1 %2623, %v624_v63   ;;  %785 = vperm.xlu0 %2622, %v623_v3   ;;  %v479_v63 = vmul.f32 %v461_v46, %v2957_v8  ;;  %v482_v8 = vmul.f32 %v473_v39, %v2979_v19  ;;  %v2637_v39 = vld [vmem:[%s4280_s4 + $0x68] sm:$0xff]   ;;  %v2644_v46 = vld [vmem:[%s4280_s4 + $0xa0] sm:$0xff]  }
 0x2d3   : > { %800 = vperm.xlu1 %2623, %v626_v4   ;;  %795 = vperm.xlu0 %2622, %v625_v5  }
 0x2d7   : > { %810 = vperm.xlu1 %2623, %v628_v9   ;;  %805 = vperm.xlu0 %2622, %v627_v10  }
 0x2db   : > { %820 = vperm.xlu1 %2623, %v630_v11   ;;  %815 = vperm.xlu0 %2622, %v629_v12   ;;  %v662_v11 = vld [vmem:[%s4281_s5 + $0x1f8] sm:$0xff]  ;;  %v661_v12 = vld [vmem:[%s4281_s5 + $0x1f0] sm:$0xff] }
 0x2df   : > { %830 = vperm.xlu1 %2623, %v632_v13   ;;  %825 = vperm.xlu0 %2622, %v631_v14  }
 0x2e3   : > { %840 = vperm.xlu1 %2623, %v634_v30   ;;  %835 = vperm.xlu0 %2622, %v633_v15  }
 0x2e7   : > { %850 = vperm.xlu1 %2623, %v636_v16   ;;  %845 = vperm.xlu0 %2622, %v635_v17   ;;  %v2155_v17 = vld [vmem:[%s4283_s7 + $0x8] sm:$0xff] }
 0x2eb   : > { %860 = vperm.xlu1 %2623, %v638_v18   ;;  %855 = vperm.xlu0 %2622, %v637_v28   ;;  %v2154_v18 = vld [vmem:[%s4283_s7] sm:$0xff]  ;;  %v2156_v28 = vld [vmem:[%s4283_s7 + $0x10] sm:$0xff] }
 0x2ef   : > { %870 = vperm.xlu1 %2623, %v640_v32   ;;  %865 = vperm.xlu0 %2622, %v639_v21   ;;  %v2626_v32 = vld [vmem:[%s4280_s4 + $0x10] sm:$0xff]   ;;  %v2159_v21 = vld [vmem:[%s4283_s7 + $0x28] sm:$0xff] }
 0x2f3   : > { %880 = vperm.xlu1 %2623, %v642_v23   ;;  %875 = vperm.xlu0 %2622, %v641_v24   ;;  %v2161_v23 = vld [vmem:[%s4283_s7 + $0x38] sm:$0xff]  ;;  %v2160_v24 = vld [vmem:[%s4283_s7 + $0x30] sm:$0xff] }
 0x2f7   : > { %890 = vperm.xlu1 %2623, %v644_v34   ;;  %885 = vperm.xlu0 %2622, %v643_v25   ;;  %v2627_v34 = vld [vmem:[%s4280_s4 + $0x18] sm:$0xff]   ;;  %v2628_v25 = vld [vmem:[%s4280_s4 + $0x20] sm:$0xff]  }
 0x2fb   : > { %900 = vperm.xlu1 %2623, %v646_v29   ;;  %895 = vperm.xlu0 %2622, %v645_v31   ;;  %v2630_v29 = vld [vmem:[%s4280_s4 + $0x30] sm:$0xff]   ;;  %v2631_v31 = vld [vmem:[%s4280_s4 + $0x38] sm:$0xff]  }
 0x2ff   : > { %910 = vperm.xlu1 %2623, %v648_v36   ;;  %905 = vperm.xlu0 %2622, %v647_v35   ;;  %v2633_v36 = vld [vmem:[%s4280_s4 + $0x48] sm:$0xff]   ;;  %v2634_v35 = vld [vmem:[%s4280_s4 + $0x50] sm:$0xff]  }
 0x303   : > { %920 = vperm.xlu1 %2623, %v650_v37   ;;  %915 = vperm.xlu0 %2622, %v649_v38   ;;  %v2635_v37 = vld [vmem:[%s4280_s4 + $0x58] sm:$0xff]   ;;  %v2636_v38 = vld [vmem:[%s4280_s4 + $0x60] sm:$0xff]  }
 0x307   : > { %930 = vperm.xlu1 %2623, %v652_v41   ;;  %925 = vperm.xlu0 %2622, %v651_v42   ;;  %v2639_v41 = vld [vmem:[%s4280_s4 + $0x78] sm:$0xff]   ;;  %v2640_v42 = vld [vmem:[%s4280_s4 + $0x80] sm:$0xff]  }
 0x30b   : > { %v486_v47 = vpop.permute.xlu1 %485  ;;  %940 = vperm.xlu1 %2623, %v654_v44   ;;  %935 = vperm.xlu0 %2622, %v653_v45   ;;  %v2642_v44 = vld [vmem:[%s4280_s4 + $0x90] sm:$0xff]   ;;  %v2643_v45 = vld [vmem:[%s4280_s4 + $0x98] sm:$0xff]  }
 0x30c   : > { %v523_v53 = vadd.f32 %v486_v47, %v475_v49  ;;  %v2645_v47 = vld [vmem:[%s4280_s4 + $0xa8] sm:$0xff]   ;;  %v2647_v49 = vld [vmem:[%s4280_s4 + $0xb8] sm:$0xff]  }
 0x30d   : > { %v491_v52 = vpop.permute.xlu0 %490 }
 0x30e   : > { %v524_v54 = vadd.f32 %v491_v52, %v476_v48  ;;  %v2646_v48 = vld [vmem:[%s4280_s4 + $0xb0] sm:$0xff]  }
 0x30f   : > { %950 = vperm.xlu1 %2623, %v656_v50   ;;  %945 = vperm.xlu0 %2622, %v655_v51   ;;  %v2648_v50 = vld [vmem:[%s4280_s4 + $0xc0] sm:$0xff]   ;;  %v2649_v51 = vld [vmem:[%s4280_s4 + $0xc8] sm:$0xff]   ;;  %v2650_v52 = vld [vmem:[%s4280_s4 + $0xd0] sm:$0xff]  }
 0x310   : > { %v531_v56 = vpack.c.bf16 %v524_v54, %v523_v53  ;;  %v2651_v53 = vld [vmem:[%s4280_s4 + $0xd8] sm:$0xff]   ;;  %v2652_v54 = vld [vmem:[%s4280_s4 + $0xe0] sm:$0xff]  }
 0x311   : > { %v501_v58 = vpop.permute.xlu1 %500 }
 0x312   : > { %v526_v59 = vadd.f32 %v501_v58, %v478_v55  ;;  %2517 = vmatprep.subr.bf16.mxu1 %v531_v56  ;;  %v496_v60 = vpop.permute.xlu0 %495  ;;  %v2653_v55 = vld [vmem:[%s4280_s4 + $0xe8] sm:$0xff]  }
 0x313   : > { %v525_v61 = vadd.f32 %v496_v60, %v477_v57  ;;  %960 = vperm.xlu1 %2623, %v658_v1   ;;  %955 = vperm.xlu0 %2622, %v657_v2   ;;  %v2655_v1 = vld [vmem:[%s4280_s4 + $0xf8] sm:$0xff]  }
 0x314   : > { %2518 = vmatpush3.bf16.msra.mxu1 %v531_v56  ;;  %v2654_v56 = vld [vmem:[%s4280_s4 + $0xf0] sm:$0xff]  }
 0x315   : > { %v532_v3 = vpack.c.bf16 %v526_v59, %v525_v61 }
 0x316   : > { %v506_v4 = vpop.permute.xlu1 %505  ;;  %v511_v5 = vpop.permute.xlu0 %510 }
 0x317   : > { %v527_v9 = vadd.f32 %v506_v4, %v479_v63  ;;  %v528_v10 = vadd.f32 %v511_v5, %v480_v6  ;;  %970 = vperm.xlu1 %2623, %v660_v0   ;;  %965 = vperm.xlu0 %2622, %v659_v62  }
 0x318   : > { %2519 = vmatprep.subr.bf16.mxu1 %v532_v3 }
 0x319   : > { %v533_v13 = vpack.c.bf16 %v528_v10, %v527_v9  ;;  %2520 = vmatpush3.bf16.msra.mxu1 %v532_v3 }
 0x31a   : > { %v521_v14 = vpop.permute.xlu1 %520  ;;  %v516_v30 = vpop.permute.xlu0 %515 }
 0x31b   : > { %v530_v15 = vadd.f32 %v521_v14, %v482_v8  ;;  %v529_v16 = vadd.f32 %v516_v30, %v481_v7  ;;  %980 = vperm.xlu1 %2623, %v662_v11   ;;  %975 = vperm.xlu0 %2622, %v661_v12  }
 0x31c   : > { %2521 = vmatprep.subr.bf16.mxu1 %v533_v13 }
 0x31d   : > { %v534_v19 = vpack.c.bf16 %v530_v15, %v529_v16  ;;  %2522 = vmatpush3.bf16.msra.mxu1 %v533_v13 }
 0x31e   : > { %v666_v2 = vpop.permute.xlu0 %665  ;;  %v671_v57 = vpop.permute.xlu1 %670 }
 0x31f   : > { %2169 = vperm.xlu1 %2623, %v2155_v17   ;;  %2164 = vperm.xlu0 %2622, %v2154_v18  }
 0x320   : > { %2523 = vmatprep.subr.bf16.mxu1 %v534_v19 }
 0x321   : > { %2524 = vmatpush3.bf16.msra.mxu1 %v534_v19 }
 0x322   : > { %v676_v58 = vpop.permute.xlu0 %675  ;;  %v681_v59 = vpop.permute.xlu1 %680 }
 0x323   : > { %2179 = vperm.xlu1 %2623, %v2157_v26   ;;  %2174 = vperm.xlu0 %2622, %v2156_v28  }
 0x324   : > { %2526 = vmatmul.mubr.msk.bf16.vlgmr.msra.gmra.mrb[0].mxu1 %vm47_vm0, %v2625_v20 }
 0x325   : > { %2529 = vmatprep.mubr.msk.bf16.mxu1 %vm47_vm0, %v2626_v32 }
 0x326   : > { %v686_v60 = vpop.permute.xlu0 %685  ;;  %v691_v61 = vpop.permute.xlu1 %690 }
 0x327   : > { %2189 = vperm.xlu1 %2623, %v2159_v21   ;;  %2184 = vperm.xlu0 %2622, %v2158_v22  }
 0x32a   : > { %v696_v0 = vpop.permute.xlu0 %695  ;;  %v701_v62 = vpop.permute.xlu1 %700 }
 0x32b   : > { %2199 = vperm.xlu1 %2623, %v2161_v23   ;;  %2194 = vperm.xlu0 %2622, %v2160_v24  }
 0x32c   : > { %2530 = vmatmul.mubr.msk.bf16.gmra.mrb[4].mxu1 %vm47_vm0, %v2627_v34 }
 0x32d   : > { %2533 = vmatprep.mubr.msk.bf16.mxu1 %vm47_vm0, %v2628_v25 }
 0x32e   : > { %v706_v63 = vpop.permute.xlu0 %705  ;;  %v711_v6 = vpop.permute.xlu1 %710 }
 0x332   : > { %v716_v3 = vpop.permute.xlu0 %715  ;;  %v3503_v4 = vpop.permute.xlu1 %720 }
 0x334   : > { %2534 = vmatmul.mubr.msk.bf16.gmra.mrb[8].mxu1 %vm47_vm0, %v2629_v27 }
 0x335   : > { %2537 = vmatprep.mubr.msk.bf16.mxu1 %vm47_vm0, %v2630_v29 }
 0x336   : > { %v3505_v5 = vpop.permute.xlu0 %725  ;;  %v3507_v9 = vpop.permute.xlu1 %730 }
 0x33a   : > { %v736_v10 = vpop.permute.xlu0 %735  ;;  %v3509_v11 = vpop.permute.xlu1 %740 }
 0x33c   : > { %2538 = vmatmul.mubr.msk.bf16.gmra.mrb[12].mxu1 %vm47_vm0, %v2631_v31 }
 0x33d   : > { %2541 = vmatprep.mubr.msk.bf16.mxu1 %vm47_vm0, %v2632_v33 }
 0x33e   : > { %v3511_v12 = vpop.permute.xlu0 %745  ;;  %v3513_v8 = vpop.permute.xlu1 %750 }
 0x342   : > { %v3515_v7 = vpop.permute.xlu0 %755  ;;  %v3517_v13 = vpop.permute.xlu1 %760 }
 0x344   : > { %2542 = vmatmul.mubr.msk.bf16.gmra.mrb[16].mxu1 %vm47_vm0, %v2633_v36 }
 0x345   : > { %2545 = vmatprep.mubr.msk.bf16.mxu1 %vm47_vm0, %v2634_v35 }
 0x346   : > { %v3519_v14 = vpop.permute.xlu0 %765  ;;  %v3521_v30 = vpop.permute.xlu1 %770 }
 0x34a   : > { %v3523_v15 = vpop.permute.xlu0 %775  ;;  %v3525_v18 = vpop.permute.xlu1 %780 }
 0x34c   : > { %2546 = vmatmul.mubr.msk.bf16.gmra.mrb[20].mxu1 %vm47_vm0, %v2635_v37 }
 0x34d   : > { %2549 = vmatprep.mubr.msk.bf16.mxu1 %vm47_vm0, %v2636_v38 }
 0x34e   : > { %v3527_v28 = vpop.permute.xlu0 %785  ;;  %v3531_v32 = vpop.permute.xlu1 %790 }
 0x352   : > { %v3549_v37 = vpop.permute.xlu0 %795 }
 0x354   : > { %2550 = vmatmul.mubr.msk.bf16.gmra.mrb[24].mxu1 %vm47_vm0, %v2637_v39 }
 0x355   : > { %2553 = vmatprep.mubr.msk.bf16.mxu1 %vm47_vm0, %v2638_v40 }
 0x35c   : > { %2554 = vmatmul.mubr.msk.bf16.gmra.mrb[28].mxu1 %vm47_vm0, %v2639_v41 }
 0x35d   : > { %2557 = vmatprep.mubr.msk.bf16.mxu1 %vm47_vm0, %v2640_v42 }
 0x364   : > { %2558 = vmatmul.mubr.msk.bf16.gmra.mrb[32].mxu1 %vm47_vm0, %v2641_v43 }
 0x365   : > { %2561 = vmatprep.mubr.msk.bf16.mxu1 %vm47_vm0, %v2642_v44 }
 0x36c   : > { %2562 = vmatmul.mubr.msk.bf16.gmra.mrb[36].mxu1 %vm47_vm0, %v2643_v45  ;;  %v3561_v45 = vpop.permute.xlu1 %800 }
 0x36d   : > { %2565 = vmatprep.mubr.msk.bf16.mxu1 %vm47_vm0, %v2644_v46 }
 0x374   : > { %2566 = vmatmul.mubr.msk.bf16.gmra.mrb[40].mxu1 %vm47_vm0, %v2645_v47 }
 0x375   : > { %2569 = vmatprep.mubr.msk.bf16.mxu1 %vm47_vm0, %v2646_v48 }
 0x37c   : > { %2570 = vmatmul.mubr.msk.bf16.gmra.mrb[44].mxu1 %vm47_vm0, %v2647_v49 }
 0x37d   : > { %2573 = vmatprep.mubr.msk.bf16.mxu1 %vm47_vm0, %v2648_v50 }
 0x384   : > { %2574 = vmatmul.mubr.msk.bf16.gmra.mrb[48].mxu1 %vm47_vm0, %v2649_v51 }
 0x385   : > { %2577 = vmatprep.mubr.msk.bf16.mxu1 %vm47_vm0, %v2650_v52  ;;  %v3567_v52 = vpop.permute.xlu0 %805 }
 0x38c   : > { %2578 = vmatmul.mubr.msk.bf16.gmra.mrb[52].mxu1 %vm47_vm0, %v2651_v53 }
 0x38d   : > { %2581 = vmatprep.mubr.msk.bf16.mxu1 %vm47_vm0, %v2652_v54 }
 0x394   : > { %2582 = vmatmul.mubr.msk.bf16.gmra.mrb[56].mxu1 %vm47_vm0, %v2653_v55 }
 0x395   : > { %2585 = vmatprep.mubr.msk.bf16.mxu1 %vm47_vm0, %v2654_v56  ;;  %v3571_v56 = vpop.permute.xlu1 %810 }
 0x39c   : > { %2586 = vmatmul.mubr.msk.bf16.gmra.mrb[60].mxu1 %vm47_vm0, %v2655_v1 }
 0x3f7   : > { %v2527_v16 = vpop.f32.mrb[0].mxu1 }
 0x3f8   : > { %v1273_v17 = vpop.f32.mrb[1].mxu1  ;;  %v3529_v20 = vadd.f32 %v2527_v16, %v676_v58 }
 0x3f9   : > { %v2528_v19 = vpop.f32.mrb[2].mxu1  ;;  %v3533_v21 = vadd.f32 %v1273_v17, %v666_v2 }
 0x3fa   : > { %v1276_v26 = vpop.f32.mrb[3].mxu1  ;;  %v3535_v23 = vadd.f32 %v2528_v19, %v681_v59  ;;  %v1530_v31 = vsel %vm47_vm0, %v3529_v20, -inf }
 0x3fb   : > { %v3539_v25 = vadd.f32 %v1276_v26, %v671_v57  ;;  %v1528_v38 = vsel %vm47_vm0, %v3533_v21, -inf }
 0x3fc   : > { %v1531_v42 = vsel %vm47_vm0, %v3535_v23, -inf }
 0x3fd   : > { %v1529_v46 = vsel %vm47_vm0, %v3539_v25, -inf }
 0x3ff   : > { %v2531_v22 = vpop.f32.mrb[4].mxu1 }
 0x400   : > { %v3537_v24 = vadd.f32 %v2531_v22, %v696_v0  ;;  %v1289_v34 = vpop.f32.mrb[5].mxu1 }
 0x401   : > { %v3541_v27 = vadd.f32 %v1289_v34, %v686_v60  ;;  %v2532_v29 = vpop.f32.mrb[6].mxu1  ;;  %v3579_v60 = vpop.permute.xlu0 %815 }
 0x402   : > { %v1536_v33 = vsel %vm47_vm0, %v3537_v24, -inf  ;;  %v3547_v36 = vadd.f32 %v2532_v29, %v701_v62  ;;  %v1292_v35 = vpop.f32.mrb[7].mxu1 }
 0x403   : > { %v1537_v39 = vmax.f32 %v1530_v31, %v1536_v33  ;;  %v1532_v40 = vsel %vm47_vm0, %v3541_v27, -inf  ;;  %v3555_v41 = vadd.f32 %v1292_v35, %v691_v61 }
 0x404   : > { %v1533_v43 = vmax.f32 %v1528_v38, %v1532_v40  ;;  %v1538_v44 = vsel %vm47_vm0, %v3547_v36, -inf }
 0x405   : > { %v1539_v47 = vmax.f32 %v1531_v42, %v1538_v44  ;;  %v1534_v48 = vsel %vm47_vm0, %v3555_v41, -inf }
 0x406   : > { %v1535_v49 = vmax.f32 %v1529_v46, %v1534_v48 }
 0x407   : > { %v2535_v50 = vpop.f32.mrb[8].mxu1 }
 0x408   : > { %v1305_v51 = vpop.f32.mrb[9].mxu1  ;;  %v3581_v0 = vadd.f32 %v2535_v50, %v716_v3  ;;  %v3598_v3 = vpop.permute.xlu0 %825 }
 0x409   : > { %v3569_v53 = vadd.f32 %v1305_v51, %v706_v63  ;;  %v2536_v54 = vpop.f32.mrb[10].mxu1  ;;  %v3583_v63 = vpop.permute.xlu1 %820 }
 0x40a   : > { %v1308_v55 = vpop.f32.mrb[11].mxu1  ;;  %4310 = vst [vmem:[#allocation5_spill] sm:$0xff] %v3581_v0  ;;  %v3586_v17 = vadd.f32 %v2536_v54, %v3503_v4  ;;  %v1544_v22 = vsel %vm47_vm0, %v3581_v0, -inf }
 0x40b   : > { %v1540_v1 = vsel %vm47_vm0, %v3569_v53, -inf  ;;  %v3575_v2 = vadd.f32 %v1308_v55, %v711_v6 }
 0x40c   : > { %v1541_v57 = vmax.f32 %v1533_v43, %v1540_v1  ;;  %4311 = vst [vmem:[#allocation6_spill] sm:$0xff] %v3586_v17  ;;  %v1546_v4 = vsel %vm47_vm0, %v3586_v17, -inf }
 0x40d   : > { %v1542_v58 = vsel %vm47_vm0, %v3575_v2, -inf  ;;  %v3607_v31 = vpop.permute.xlu1 %830  ;;  %v1547_v40 = vmax.f32 %v1539_v47, %v1546_v4 }
 0x40e   : > { %v1543_v59 = vmax.f32 %v1535_v49, %v1542_v58 }
 0x40f   : > { %v2539_v61 = vpop.f32.mrb[12].mxu1 }
 0x410   : > { %v1321_v62 = vpop.f32.mrb[13].mxu1  ;;  %v3588_v19 = vadd.f32 %v2539_v61, %v736_v10 }
 0x411   : > { %v2540_v16 = vpop.f32.mrb[14].mxu1  ;;  %v3591_v26 = vadd.f32 %v1321_v62, %v3505_v5  ;;  %v1545_v5 = vmax.f32 %v1537_v39, %v1544_v22  ;;  %v3635_v58 = vpop.permute.xlu1 %840 }
 0x412   : > { %4312 = vst [vmem:[#allocation7_spill] sm:$0xff] %v3588_v19  ;;  %v1324_v6 = vpop.f32.mrb[15].mxu1  ;;  %v3596_v34 = vadd.f32 %v2540_v16, %v3509_v11  ;;  %v1552_v10 = vsel %vm47_vm0, %v3588_v19, -inf }
 0x413   : > { %4313 = vst [vmem:[#allocation8_spill] sm:$0xff] %v3591_v26  ;;  %v3601_v29 = vadd.f32 %v1324_v6, %v3507_v9  ;;  %v1548_v33 = vsel %vm47_vm0, %v3591_v26, -inf  ;;  %v1553_v42 = vmax.f32 %v1545_v5, %v1552_v10 }
 0x414   : > { %4314 = vst [vmem:[#allocation9_spill] sm:$0xff] %v3596_v34  ;;  %v1554_v11 = vsel %vm47_vm0, %v3596_v34, -inf  ;;  %v1549_v46 = vmax.f32 %v1541_v57, %v1548_v33 }
 0x415   : > { %4315 = vst [vmem:[#allocation10_spill] sm:$0xff] %v3601_v29  ;;  %v1550_v43 = vsel %vm47_vm0, %v3601_v29, -inf  ;;  %v1555_v51 = vmax.f32 %v1547_v40, %v1554_v11 }
 0x417   : > { %v2543_v35 = vpop.f32.mrb[16].mxu1 }
 0x418   : > { %v3614_v38 = vadd.f32 %v2543_v35, %v3515_v7  ;;  %v1337_v9 = vpop.f32.mrb[17].mxu1  ;;  %v3626_v7 = vpop.permute.xlu0 %835 }
 0x419   : > { %v3619_v44 = vadd.f32 %v1337_v9, %v3511_v12  ;;  %v2544_v39 = vpop.f32.mrb[18].mxu1  ;;  %v1551_v12 = vmax.f32 %v1543_v59, %v1550_v43  ;;  %v3652_v35 = vpop.permute.xlu1 %850 }
 0x41a   : > { %v1560_v48 = vsel %vm47_vm0, %v3614_v38, -inf  ;;  %v3624_v49 = vadd.f32 %v2544_v39, %v3517_v13  ;;  %v1340_v50 = vpop.f32.mrb[19].mxu1 }
 0x41b   : > { %v1561_v47 = vmax.f32 %v1553_v42, %v1560_v48  ;;  %v1556_v54 = vsel %vm47_vm0, %v3619_v44, -inf  ;;  %v3631_v55 = vadd.f32 %v1340_v50, %v3513_v8 }
 0x41c   : > { %v1557_v1 = vmax.f32 %v1549_v46, %v1556_v54  ;;  %v1562_v57 = vsel %vm47_vm0, %v3624_v49, -inf  ;;  %v3642_v4 = vpop.permute.xlu0 %845 }
 0x41d   : > { %v1563_v13 = vmax.f32 %v1555_v51, %v1562_v57  ;;  %v1558_v61 = vsel %vm47_vm0, %v3631_v55, -inf  ;;  %v861_v51 = vpop.permute.xlu1 %860 }
 0x41e   : > { %v1559_v62 = vmax.f32 %v1551_v12, %v1558_v61 }
 0x41f   : > { %v2547_v16 = vpop.f32.mrb[20].mxu1 }
 0x420   : > { %v3640_v6 = vadd.f32 %v2547_v16, %v3523_v15  ;;  %v1353_v22 = vpop.f32.mrb[21].mxu1  ;;  %v3663_v39 = vpop.permute.xlu0 %855 }
 0x421   : > { %v3645_v8 = vadd.f32 %v1353_v22, %v3519_v14  ;;  %v2548_v59 = vpop.f32.mrb[22].mxu1 }
 0x422   : > { %v1568_v10 = vsel %vm47_vm0, %v3640_v6, -inf  ;;  %v3650_v5 = vadd.f32 %v2548_v59, %v3525_v18  ;;  %v1356_v33 = vpop.f32.mrb[23].mxu1  ;;  %v871_v59 = vpop.permute.xlu1 %870 }
 0x423   : > { %v1569_v11 = vmax.f32 %v1561_v47, %v1568_v10  ;;  %v1564_v15 = vsel %vm47_vm0, %v3645_v8, -inf  ;;  %v3657_v9 = vadd.f32 %v1356_v33, %v3521_v30 }
 0x424   : > { %v1565_v40 = vmax.f32 %v1557_v1, %v1564_v15  ;;  %v1570_v14 = vsel %vm47_vm0, %v3650_v5, -inf }
 0x425   : > { %v1571_v42 = vmax.f32 %v1563_v13, %v1570_v14  ;;  %v1566_v43 = vsel %vm47_vm0, %v3657_v9, -inf }
 0x426   : > { %v1567_v18 = vmax.f32 %v1559_v62, %v1566_v43  ;;  %v866_v62 = vpop.permute.xlu0 %865 }
 0x427   : > { %v2551_v46 = vpop.f32.mrb[24].mxu1 }
 0x428   : > { %v3666_v48 = vadd.f32 %v2551_v46, %v3549_v37  ;;  %v1369_v50 = vpop.f32.mrb[25].mxu1 }
 0x429   : > { %v3669_v30 = vadd.f32 %v1369_v50, %v3527_v28  ;;  %v2552_v47 = vpop.f32.mrb[26].mxu1 }
 0x42a   : > { %v1576_v54 = vsel %vm47_vm0, %v3666_v48, -inf  ;;  %v3674_v12 = vadd.f32 %v2552_v47, %v3561_v45  ;;  %v1372_v1 = vpop.f32.mrb[27].mxu1  ;;  %v876_v43 = vpop.permute.xlu0 %875 }
 0x42b   : > { %v3676_v57 = vmax.f32 %v1569_v11, %v1576_v54  ;;  %v1572_v13 = vsel %vm47_vm0, %v3669_v30, -inf  ;;  %v3681_v37 = vadd.f32 %v1372_v1, %v3531_v32  ;;  %v881_v47 = vpop.permute.xlu1 %880 }
 0x42c   : > { %v1573_v61 = vmax.f32 %v1565_v40, %v1572_v13  ;;  %v1578_v28 = vsel %vm47_vm0, %v3674_v12, -inf }
 0x42d   : > { %v1579_v16 = vmax.f32 %v1571_v42, %v1578_v28  ;;  %v1574_v22 = vsel %vm47_vm0, %v3681_v37, -inf }
 0x42e   : > { %v3687_v45 = vmax.f32 %v1567_v18, %v1574_v22  ;;  %v886_v22 = vpop.permute.xlu0 %885 }
 0x42f   : > { %v2555_v10 = vpop.f32.mrb[28].mxu1 }
 0x430   : > { %v3690_v33 = vadd.f32 %v2555_v10, %v3579_v60  ;;  %v1385_v11 = vpop.f32.mrb[29].mxu1 }
 0x431   : > { %v3693_v32 = vadd.f32 %v1385_v11, %v3567_v52  ;;  %v2556_v15 = vpop.f32.mrb[30].mxu1 }
 0x432   : > { %4316 = vst [vmem:[#allocation11_spill] sm:$0xff] %v3690_v33  ;;  %v3697_v40 = vsel %vm47_vm0, %v3690_v33, -inf  ;;  %v3700_v14 = vadd.f32 %v2556_v15, %v3583_v63  ;;  %v1388_v42 = vpop.f32.mrb[31].mxu1  ;;  %v891_v15 = vpop.permute.xlu1 %890 }
 0x433   : > { %4317 = vst [vmem:[#allocation12_spill] sm:$0xff] %v3693_v32  ;;  %v1580_v60 = vsel %vm47_vm0, %v3693_v32, -inf  ;;  %v3707_v46 = vadd.f32 %v1388_v42, %v3571_v56  ;;  %v896_v18 = vpop.permute.xlu0 %895 }
 0x434   : > { %4318 = vst [vmem:[#allocation13_spill] sm:$0xff] %v3700_v14  ;;  %v1581_v52 = vmax.f32 %v1573_v61, %v1580_v60  ;;  %v1586_v50 = vsel %vm47_vm0, %v3700_v14, -inf }
 0x435   : > { %4319 = vst [vmem:[#allocation14_spill] sm:$0xff] %v3707_v46  ;;  %v1587_v54 = vmax.f32 %v1579_v16, %v1586_v50  ;;  %v1582_v63 = vsel %vm47_vm0, %v3707_v46, -inf }
 0x436   : > { %v1583_v1 = vmax.f32 %v3687_v45, %v1582_v63  ;;  %v901_v61 = vpop.permute.xlu1 %900 }
 0x437   : > { %v2559_v13 = vpop.f32.mrb[32].mxu1  ;;  %v3714_v19 = vpop.permute.xlu0 %905 }
 0x438   : > { %v1401_v28 = vpop.f32.mrb[33].mxu1  ;;  %v3733_v32 = vadd.f32 %v2559_v13, %v3626_v7 }
 0x439   : > { %v2560_v10 = vpop.f32.mrb[34].mxu1  ;;  %v3719_v50 = vadd.f32 %v1401_v28, %v3598_v3 }
 0x43a   : > { %v1404_v11 = vpop.f32.mrb[35].mxu1  ;;  %v3716_v16 = vpop.permute.xlu1 %910  ;;  %v3722_v63 = vadd.f32 %v2560_v10, %v3635_v58  ;;  %4323 = vst [vmem:[#allocation18_spill] sm:$0xff] %v3733_v32 }
 0x43b   : > { %v3725_v26 = vadd.f32 %v1404_v11, %v3607_v31  ;;  %v916_v46 = vpop.permute.xlu0 %915  ;;  %v1588_v3 = vsel %vm47_vm0, %v3719_v50, -inf }
 0x43c   : > { %4320 = vst [vmem:[#allocation15_spill] sm:$0xff] %v3722_v63  ;;  %v1594_v31 = vsel %vm47_vm0, %v3722_v63, -inf }
 0x43d   : > { %v1590_v10 = vsel %vm47_vm0, %v3725_v26, -inf }
 0x43f   : > { %v2563_v56 = vpop.f32.mrb[36].mxu1 }
 0x440   : > { %v1417_v42 = vpop.f32.mrb[37].mxu1  ;;  %v3749_v7 = vadd.f32 %v2563_v56, %v3663_v39  ;;  %v1591_v56 = vmax.f32 %v1583_v1, %v1590_v10 }
 0x441   : > { %v2564_v60 = vpop.f32.mrb[38].mxu1  ;;  %v3728_v17 = vadd.f32 %v1417_v42, %v3642_v4 }
 0x442   : > { %v1420_v34 = vpop.f32.mrb[39].mxu1  ;;  %v3730_v14 = vadd.f32 %v2564_v60, %v861_v51  ;;  %v921_v51 = vpop.permute.xlu1 %920  ;;  %4327 = vst [vmem:[#allocation22_spill] sm:$0xff] %v3749_v7 }
 0x443   : > { %4321 = vst [vmem:[#allocation16_spill] sm:$0xff] %v3728_v17  ;;  %v3738_v58 = vadd.f32 %v1420_v34, %v3652_v35  ;;  %v1596_v13 = vsel %vm47_vm0, %v3728_v17, -inf  ;;  %v1589_v34 = vmax.f32 %v1581_v52, %v1588_v3  ;;  %v1595_v35 = vmax.f32 %v1587_v54, %v1594_v31  ;;  %v926_v52 = vpop.permute.xlu0 %925 }
 0x444   : > { %4322 = vst [vmem:[#allocation17_spill] sm:$0xff] %v3730_v14  ;;  %v1600_v3 = vsel %vm47_vm0, %v3749_v7, -inf }
 0x445   : > { %4324 = vst [vmem:[#allocation19_spill] sm:$0xff] %v3738_v58  ;;  %v1597_v42 = vmax.f32 %v1589_v34, %v1596_v13  ;;  %v4331_v34 = vmax.f32 %v3676_v57, %v3697_v40 }
 0x446   : > { %v931_v13 = vpop.permute.xlu1 %930 }
 0x447   : > { %v2567_v45 = vpop.f32.mrb[40].mxu1 }
 0x448   : > { %v1433_v29 = vpop.f32.mrb[41].mxu1  ;;  %v3763_v60 = vadd.f32 %v2567_v45, %v876_v43 }
 0x449   : > { %v2568_v0 = vpop.f32.mrb[42].mxu1  ;;  %v3740_v28 = vadd.f32 %v1433_v29, %v866_v62  ;;  %v1602_v29 = vsel %vm47_vm0, %v3730_v14, -inf  ;;  %v1598_v62 = vsel %vm47_vm0, %v3738_v58, -inf }
 0x44a   : > { %v1436_v33 = vpop.f32.mrb[43].mxu1  ;;  %v3744_v4 = vadd.f32 %v2568_v0, %v881_v47  ;;  %v1592_v0 = vsel %vm47_vm0, %v3733_v32, -inf  ;;  %4329 = vst [vmem:[#allocation24_spill] sm:$0xff] %v3763_v60  ;;  %v1603_v54 = vmax.f32 %v1595_v35, %v1602_v29  ;;  %v1599_v58 = vmax.f32 %v1591_v56, %v1598_v62 }
 0x44b   : > { %4325 = vst [vmem:[#allocation20_spill] sm:$0xff] %v3740_v28  ;;  %v3753_v11 = vadd.f32 %v1436_v33, %v871_v59  ;;  %v1604_v39 = vsel %vm47_vm0, %v3740_v28, -inf }
 0x44c   : > { %4326 = vst [vmem:[#allocation21_spill] sm:$0xff] %v3744_v4  ;;  %v1610_v59 = vsel %vm47_vm0, %v3744_v4, -inf  ;;  %v1605_v1 = vmax.f32 %v1597_v42, %v1604_v39  ;;  %v1593_v4 = vmax.f32 %v4331_v34, %v1592_v0 }
 0x44d   : > { %4328 = vst [vmem:[#allocation23_spill] sm:$0xff] %v3753_v11  ;;  %v1606_v31 = vsel %vm47_vm0, %v3753_v11, -inf  ;;  %v1611_v7 = vmax.f32 %v1603_v54, %v1610_v59 }
 0x44e   : > { %v1607_v62 = vmax.f32 %v1599_v58, %v1606_v31  ;;  %v2658_v58 = vld [vmem:[%s4282_s6 + $0x4] ss:$16 sps:$4 sm:$0xff]  }
 0x44f   : > { %v2571_v47 = vpop.f32.mrb[44].mxu1  ;;  %2029 = vmatprep.mubr.bf16.mxu0 %v2658_v58 }
 0x450   : > { %v1449_v33 = vpop.f32.mrb[45].mxu1  ;;  %v3773_v10 = vadd.f32 %v2571_v47, %v896_v18  ;;  %v936_v47 = vpop.permute.xlu0 %935 }
 0x451   : > { %v3771_v14 = vadd.f32 %v1449_v33, %v886_v22  ;;  %v2572_v28 = vpop.f32.mrb[46].mxu1  ;;  %v1608_v22 = vsel %vm47_vm0, %v3763_v60, -inf  ;;  %v941_v33 = vpop.permute.xlu1 %940 }
 0x452   : > { %4330 = vst [vmem:[#allocation25_spill] sm:$0xff] %v3773_v10  ;;  %v3775_v43 = vadd.f32 %v2572_v28, %v901_v61  ;;  %v1452_v45 = vpop.f32.mrb[47].mxu1  ;;  %v1601_v28 = vmax.f32 %v1593_v4, %v1600_v3  ;;  %v1616_v40 = vsel %vm47_vm0, %v3773_v10, -inf }
 0x453   : > { %v1612_v29 = vsel %vm47_vm0, %v3771_v14, -inf  ;;  %v3782_v35 = vadd.f32 %v1452_v45, %v891_v15 }
 0x454   : > { %v1613_v18 = vmax.f32 %v1605_v1, %v1612_v29  ;;  %v1618_v61 = vsel %vm47_vm0, %v3775_v43, -inf  ;;  %v1609_v15 = vmax.f32 %v1601_v28, %v1608_v22  ;;  %v946_v22 = vpop.permute.xlu0 %945 }
 0x455   : > { %v1619_v39 = vmax.f32 %v1611_v7, %v1618_v61  ;;  %v1614_v57 = vsel %vm47_vm0, %v3782_v35, -inf  ;;  %v951_v28 = vpop.permute.xlu1 %950 }
 0x456   : > { %v1615_v0 = vmax.f32 %v1607_v62, %v1614_v57  ;;  %v1617_v4 = vmax.f32 %v1609_v15, %v1616_v40 }
 0x457   : > { %v2575_v56 = vpop.f32.mrb[48].mxu1 }
 0x458   : > { %v3792_v42 = vadd.f32 %v2575_v56, %v916_v46  ;;  %v1465_v59 = vpop.f32.mrb[49].mxu1 }
 0x459   : > { %v3798_v7 = vadd.f32 %v1465_v59, %v3714_v19  ;;  %v2576_v3 = vpop.f32.mrb[50].mxu1 }
 0x45a   : > { %v1624_v54 = vsel %vm47_vm0, %v3792_v42, -inf  ;;  %v3802_v31 = vadd.f32 %v2576_v3, %v921_v51  ;;  %v1468_v1 = vpop.f32.mrb[51].mxu1 }
 0x45b   : > { %v1625_v46 = vmax.f32 %v1617_v4, %v1624_v54  ;;  %v1620_v45 = vsel %vm47_vm0, %v3798_v7, -inf  ;;  %v3807_v34 = vadd.f32 %v1468_v1, %v3716_v16  ;;  %v956_v4 = vpop.permute.xlu0 %955 }
 0x45c   : > { %v1621_v29 = vmax.f32 %v1613_v18, %v1620_v45  ;;  %v1626_v19 = vsel %vm47_vm0, %v3802_v31, -inf }
 0x45d   : > { %v1627_v62 = vmax.f32 %v1619_v39, %v1626_v19  ;;  %v1622_v61 = vsel %vm47_vm0, %v3807_v34, -inf }
 0x45e   : > { %v1623_v51 = vmax.f32 %v1615_v0, %v1622_v61 }
 0x45f   : > { %v2579_v57 = vpop.f32.mrb[52].mxu1 }
 0x460   : > { %v3813_v40 = vadd.f32 %v2579_v57, %v936_v47  ;;  %v1481_v15 = vpop.f32.mrb[53].mxu1 }
 0x461   : > { %v3815_v56 = vadd.f32 %v1481_v15, %v926_v52  ;;  %v2580_v59 = vpop.f32.mrb[54].mxu1  ;;  %v961_v52 = vpop.permute.xlu1 %960 }
 0x462   : > { %v1632_v16 = vsel %vm47_vm0, %v3813_v40, -inf  ;;  %v3819_v18 = vadd.f32 %v2580_v59, %v941_v33  ;;  %v1484_v58 = vpop.f32.mrb[55].mxu1 }
 0x463   : > { %v1633_v39 = vmax.f32 %v1625_v46, %v1632_v16  ;;  %v1628_v3 = vsel %vm47_vm0, %v3815_v56, -inf  ;;  %v3823_v0 = vadd.f32 %v1484_v58, %v931_v13  ;;  %v966_v46 = vpop.permute.xlu0 %965 }
 0x464   : > { %v1629_v54 = vmax.f32 %v1621_v29, %v1628_v3  ;;  %v1634_v47 = vsel %vm47_vm0, %v3819_v18, -inf }
 0x465   : > { %v1635_v1 = vmax.f32 %v1627_v62, %v1634_v47  ;;  %v1630_v45 = vsel %vm47_vm0, %v3823_v0, -inf  ;;  %v971_v58 = vpop.permute.xlu1 %970 }
 0x466   : > { %v1631_v19 = vmax.f32 %v1623_v51, %v1630_v45 }
 0x467   : > { %v2583_v33 = vpop.f32.mrb[56].mxu1 }
 0x468   : > { %v3829_v61 = vadd.f32 %v2583_v33, %v956_v4  ;;  %v1497_v57 = vpop.f32.mrb[57].mxu1 }
 0x469   : > { %v3831_v15 = vadd.f32 %v1497_v57, %v946_v22  ;;  %v2584_v59 = vpop.f32.mrb[58].mxu1  ;;  %v976_v57 = vpop.permute.xlu0 %975 }
 0x46a   : > { %v1640_v13 = vsel %vm47_vm0, %v3829_v61, -inf  ;;  %v3835_v29 = vadd.f32 %v2584_v59, %v961_v52  ;;  %v1500_v16 = vpop.f32.mrb[59].mxu1 }
 0x46b   : > { %v1641_v62 = vmax.f32 %v1633_v39, %v1640_v13  ;;  %v1636_v3 = vsel %vm47_vm0, %v3831_v15, -inf  ;;  %v3839_v51 = vadd.f32 %v1500_v16, %v951_v28  ;;  %v981_v39 = vpop.permute.xlu1 %980 }
 0x46c   : > { %v1637_v4 = vmax.f32 %v1629_v54, %v1636_v3  ;;  %v1642_v47 = vsel %vm47_vm0, %v3835_v29, -inf }
 0x46d   : > { %v1643_v22 = vmax.f32 %v1635_v1, %v1642_v47  ;;  %v1638_v45 = vsel %vm47_vm0, %v3839_v51, -inf }
 0x46e   : > { %v1639_v33 = vmax.f32 %v1631_v19, %v1638_v45 }
 0x46f   : > { %v2587_v52 = vpop.f32.mrb[60].mxu1 }
 0x470   : > { %v3845_v59 = vadd.f32 %v2587_v52, %v976_v57  ;;  %v1513_v60 = vpop.f32.mrb[61].mxu1 }
 0x471   : > { %v3847_v13 = vadd.f32 %v1513_v60, %v966_v46  ;;  %v2588_v11 = vpop.f32.mrb[62].mxu1 }
 0x472   : > { %v1648_v28 = vsel %vm47_vm0, %v3845_v59, -inf  ;;  %v3851_v54 = vadd.f32 %v2588_v11, %v981_v39  ;;  %v1516_v16 = vpop.f32.mrb[63].mxu1 }
 0x473   : > { %v1649_v1 = vmax.f32 %v1641_v62, %v1648_v28  ;;  %v1644_v3 = vsel %vm47_vm0, %v3847_v13, -inf  ;;  %v3855_v19 = vadd.f32 %v1516_v16, %v971_v58 }
 0x474   : > { %v1645_v47 = vmax.f32 %v1637_v4, %v1644_v3  ;;  %v1650_v45 = vsel %vm47_vm0, %v3851_v54, -inf }
 0x475   : > { %v1651_v57 = vmax.f32 %v1643_v22, %v1650_v45  ;;  %v1646_v60 = vsel %vm47_vm0, %v3855_v19, -inf  ;;  %v4336_v45 = vld [vmem:[#allocation5_spill] sm:$0xff] }
 0x476   : > { %v1647_v46 = vmax.f32 %v1639_v33, %v1646_v60 }
 0x477   : > { %v1653_v52 = vmax.f32 %v1649_v1, %v1651_v57  ;;  %v4332_v57 = vld [vmem:[#allocation12_spill] sm:$0xff] }
 0x478   : > { %v1652_v10 = vmax.f32 %v1645_v47, %v1647_v46  ;;  %v4333_v46 = vld [vmem:[#allocation14_spill] sm:$0xff] }
 0x47a   : > { %v1654_v11 = vmax.f32 %v1652_v10, %v1653_v52 }
 0x47c   : > { %v1655_v39 = vrot.slane %v1654_v11, 4 }
 0x47e   : > { %v1656_v17 = vmax.f32 %v1654_v11, %v1655_v39  ;;  %v4334_v11 = vld [vmem:[#allocation11_spill] sm:$0xff] }
 0x480   : > { %v1657_v62 = vrot.slane %v1656_v17, 2 }
 0x482   : > { %v1658_v28 = vmax.f32 %v1656_v17, %v1657_v62  ;;  %v4335_v62 = vld [vmem:[#allocation13_spill] sm:$0xff] }
 0x484   : > { %v1659_v63 = vrot.slane %v1658_v28, 1 }
 0x486   : > { %v3861_v32 = vmax.f32 %v1658_v28, %v1659_v63 }
 0x488   : > { %v1722_v58 = vsub.f32 %v3855_v19, %v3861_v32  ;;  %v1661_v4 = vsub.f32 %v3533_v21, %v3861_v32  ;;  %v1662_v22 = vsub.f32 %v3539_v25, %v3861_v32  ;;  %v1663_v33 = vsub.f32 %v3529_v20, %v3861_v32 }
 0x489   : > { %v1664_v10 = vsub.f32 %v3535_v23, %v3861_v32  ;;  %v1665_v17 = vsub.f32 %v3541_v27, %v3861_v32  ;;  %v1666_v63 = vsub.f32 %v3555_v41, %v3861_v32  ;;  %v1667_v16 = vsub.f32 %v3537_v24, %v3861_v32 }
 0x48a   : > { %v1668_v21 = vsub.f32 %v3547_v36, %v3861_v32  ;;  %v1669_v25 = vsub.f32 %v3569_v53, %v3861_v32  ;;  %v1670_v20 = vsub.f32 %v3575_v2, %v3861_v32  ;;  %v1677_v23 = vsub.f32 %v3619_v44, %v3861_v32 }
 0x48b   : > { %v1678_v27 = vsub.f32 %v3631_v55, %v3861_v32  ;;  %v1679_v41 = vsub.f32 %v3614_v38, %v3861_v32  ;;  %v1724_v60 = vsub.f32 %v3851_v54, %v3861_v32  ;;  %v1725_v1 = vmul.f32 1.442695, %v1661_v4  ;;  %v4337_v4 = vld [vmem:[#allocation6_spill] sm:$0xff] }
 0x48c   : > { %v1727_v52 = vmul.f32 1.442695, %v1662_v22  ;;  %v1729_v44 = vmul.f32 1.442695, %v1663_v33  ;;  %v1731_v2 = vmul.f32 1.442695, %v1664_v10  ;;  %v1671_v24 = vsub.f32 %v4336_v45, %v3861_v32 }
 0x48d   : > { %2700 = vpow2.f32 %v1725_v1  ;;  %v1733_v39 = vmul.f32 1.442695, %v1665_v17  ;;  %v1735_v28 = vmul.f32 1.442695, %v1666_v63  ;;  %v1737_v53 = vmul.f32 1.442695, %v1667_v16 }
 0x48e   : > { %2702 = vpow2.f32 %v1727_v52  ;;  %v1739_v3 = vmul.f32 1.442695, %v1668_v21  ;;  %v1741_v47 = vmul.f32 1.442695, %v1669_v25  ;;  %v1743_v36 = vmul.f32 1.442695, %v1670_v20 }
 0x48f   : > { %2704 = vpow2.f32 %v1729_v44  ;;  %v1672_v22 = vsub.f32 %v4337_v4, %v3861_v32  ;;  %v1847_v33 = vmul.f32 1.442695, %v1722_v58  ;;  %v1745_v17 = vmul.f32 1.442695, %v1671_v24 }
 0x490   : > { %2706 = vpow2.f32 %v1731_v2  ;;  %v1757_v25 = vmul.f32 1.442695, %v1677_v23  ;;  %v1761_v19 = vmul.f32 1.442695, %v1679_v41  ;;  %v4338_v23 = vsub.f32 %v3624_v49, %v3861_v32 }
 0x491   : > { %2708 = vpow2.f32 %v1733_v39  ;;  %v1747_v16 = vmul.f32 1.442695, %v1672_v22  ;;  %v4339_v55 = vsub.f32 %v3645_v8, %v3861_v32  ;;  %v4340_v38 = vsub.f32 %v3657_v9, %v3861_v32 }
 0x492   : > { %2710 = vpow2.f32 %v1735_v28  ;;  %v1763_v24 = vmul.f32 1.442695, %v4338_v23  ;;  %v4341_v49 = vsub.f32 %v3640_v6, %v3861_v32  ;;  %v4343_v52 = vsub.f32 %v3669_v30, %v3861_v32 }
 0x493   : > { %2712 = vpow2.f32 %v1737_v53  ;;  %v1759_v53 = vmul.f32 1.442695, %v1678_v27  ;;  %v1765_v27 = vmul.f32 1.442695, %v4339_v55  ;;  %v1767_v41 = vmul.f32 1.442695, %v4340_v38 }
 0x494   : > { %2714 = vpow2.f32 %v1739_v3  ;;  %v1769_v3 = vmul.f32 1.442695, %v4341_v49  ;;  %v1773_v39 = vmul.f32 1.442695, %v4343_v52  ;;  %v4344_v30 = vsub.f32 %v3681_v37, %v3861_v32 }
 0x495   : > { %2716 = vpow2.f32 %v1741_v47  ;;  %v4342_v47 = vsub.f32 %v3650_v5, %v3861_v32  ;;  %v4348_v37 = vsub.f32 %v4332_v57, %v3861_v32 }
 0x496   : > { %2718 = vpow2.f32 %v1743_v36  ;;  %v1775_v22 = vmul.f32 1.442695, %v4344_v30 }
 0x497   : > { %v3960_v10 = vpop.eup %2700  ;;  %2720 = vpow2.f32 %v1847_v33  ;;  %v1771_v45 = vmul.f32 1.442695, %v4342_v47  ;;  %v4345_v33 = vsub.f32 %v3666_v48, %v3861_v32  ;;  %v1781_v23 = vmul.f32 1.442695, %v4348_v37  ;;  %v4349_v48 = vld [vmem:[#allocation10_spill] sm:$0xff] }
 0x498   : > { %v3962_v63 = vpop.eup %2702  ;;  %2722 = vpow2.f32 %v1745_v17  ;;  %v1674_v55 = vsub.f32 %v4349_v48, %v3861_v32 }
 0x499   : > { %v3964_v21 = vpop.eup %2704  ;;  %2724 = vpow2.f32 %v1747_v16  ;;  %v1853_v9 = vpack.c.bf16 %v3962_v63, %v3960_v10  ;;  %v1777_v10 = vmul.f32 1.442695, %v4345_v33  ;;  %v4346_v63 = vsub.f32 %v3674_v12, %v3861_v32 }
 0x49a   : > { %v3966_v20 = vpop.eup %2706  ;;  %2726 = vpow2.f32 %v1757_v25  ;;  %v4350_v12 = vsub.f32 %v4333_v46, %v3861_v32 }
 0x49b   : > { %v3971_v2 = vpop.eup %2708  ;;  %2728 = vpow2.f32 %v1759_v53  ;;  %v1854_v28 = vpack.c.bf16 %v3966_v20, %v3964_v21  ;;  %v1779_v16 = vmul.f32 1.442695, %v4346_v63  ;;  %v4347_v53 = vld [vmem:[#allocation8_spill] sm:$0xff]  ;;  %v4362_v20 = vsub.f32 %v3771_v14, %v3861_v32 }
 0x49c   : > { %v3976_v58 = vpop.eup %2710  ;;  %2730 = vpow2.f32 %v1761_v19  ;;  %v1673_v19 = vsub.f32 %v4347_v53, %v3861_v32  ;;  %v1751_v53 = vmul.f32 1.442695, %v1674_v55 }
 0x49d   : > { %v3981_v36 = vpop.eup %2712  ;;  %2732 = vpow2.f32 %v1763_v24  ;;  %v1855_v6 = vpack.c.bf16 %v3976_v58, %v3971_v2 }
 0x49e   : > { %v3986_v44 = vpop.eup %2714  ;;  %2734 = vpow2.f32 %v1765_v27  ;;  %v1783_v27 = vmul.f32 1.442695, %v4350_v12  ;;  %v1749_v33 = vmul.f32 1.442695, %v1673_v19 }
 0x49f   : > { %v3991_v1 = vpop.eup %2716  ;;  %v1856_v5 = vpack.c.bf16 %v3986_v44, %v3981_v36  ;;  %2736 = vpow2.f32 %v1767_v41  ;;  %v4351_v41 = vld [vmem:[#allocation7_spill] sm:$0xff]  ;;  %v4367_v36 = vsub.f32 %v3792_v42, %v3861_v32 }
 0x4a0   : > { %v3999_v8 = vpop.eup %2718  ;;  %2738 = vpow2.f32 %v1769_v3  ;;  %v1675_v49 = vsub.f32 %v4351_v41, %v3861_v32  ;;  %v4352_v3 = vsub.f32 %v4334_v11, %v3861_v32  ;;  %v1694_v11 = vsub.f32 %v3725_v26, %v3861_v32  ;;  %v4357_v26 = vld [vmem:[#allocation16_spill] sm:$0xff] }
 0x4a1   : > { %v1857_v4 = vpack.c.bf16 %v3999_v8, %v3991_v1  ;;  %v4020_v17 = vpop.eup %2720  ;;  %2740 = vpow2.f32 %v1771_v45  ;;  %v4353_v45 = vld [vmem:[#allocation9_spill] sm:$0xff]  ;;  %v1697_v55 = vsub.f32 %v4357_v26, %v3861_v32  ;;  %v1825_v44 = vmul.f32 1.442695, %v4367_v36 }
 0x4a2   : > { %v4025_v25 = vpop.eup %2722  ;;  %2742 = vpow2.f32 %v1773_v39  ;;  %v1785_v57 = vmul.f32 1.442695, %v4352_v3  ;;  %v1676_v52 = vsub.f32 %v4353_v45, %v3861_v32  ;;  %v4354_v39 = vsub.f32 %v4335_v62, %v3861_v32 }
 0x4a3   : > { %v4032_v24 = vpop.eup %2724  ;;  %2744 = vpow2.f32 %v1775_v22  ;;  %v1693_v22 = vsub.f32 %v3719_v50, %v3861_v32  ;;  %v1753_v12 = vmul.f32 1.442695, %v1675_v49  ;;  %v4356_v50 = vld [vmem:[#allocation15_spill] sm:$0xff]  ;;  %v1791_v45 = vmul.f32 1.442695, %v1694_v11 }
 0x4a4   : > { %v2727_v38 = vpop.eup %2726  ;;  %2746 = vpow2.f32 %v1777_v10  ;;  %v1787_v30 = vmul.f32 1.442695, %v4354_v39  ;;  %v1696_v19 = vsub.f32 %v4356_v50, %v3861_v32  ;;  %v4358_v49 = vld [vmem:[#allocation19_spill] sm:$0xff]  ;;  %v1797_v11 = vmul.f32 1.442695, %v1697_v55 }
 0x4a5   : > { %v2729_v47 = vpop.eup %2728  ;;  %2748 = vpow2.f32 %v1779_v16  ;;  %v4355_v16 = vld [vmem:[#allocation18_spill] sm:$0xff]  ;;  %v4371_v8 = vsub.f32 %v3813_v40, %v3861_v32  ;;  %v4374_v40 = vsub.f32 %v3839_v51, %v3861_v32 }
 0x4a6   : > { %v2731_v46 = vpop.eup %2730  ;;  %2750 = vpow2.f32 %v1781_v23  ;;  %v1861_v10 = vpack.c.bf16 %v2729_v47, %v2727_v38  ;;  %v1695_v48 = vsub.f32 %v4355_v16, %v3861_v32  ;;  %v1755_v23 = vmul.f32 1.442695, %v1676_v52 }
 0x4a7   : > { %v2733_v63 = vpop.eup %2732  ;;  %2752 = vpow2.f32 %v1783_v27  ;;  %v1789_v27 = vmul.f32 1.442695, %v1693_v22  ;;  %v1795_v22 = vmul.f32 1.442695, %v1696_v19 }
 0x4a8   : > { %v2735_v37 = vpop.eup %2734  ;;  %2754 = vpow2.f32 %v1785_v57  ;;  %2397 = vmatprep.subr.bf16.mxu0 %v1861_v10  ;;  %v1862_v62 = vpack.c.bf16 %v2733_v63, %v2731_v46  ;;  %v1698_v57 = vsub.f32 %v4358_v49, %v3861_v32  ;;  %v4359_v46 = vld [vmem:[#allocation22_spill] sm:$0xff]  ;;  %v4360_v63 = vld [vmem:[#allocation17_spill] sm:$0xff] }
 0x4a9   : > { %v2737_v41 = vpop.eup %2736  ;;  %2756 = vpow2.f32 %v1787_v30  ;;  %2398 = vmatpush3.bf16.msra.mxu0 %v1853_v9  ;;  %v1699_v52 = vsub.f32 %v4359_v46, %v3861_v32  ;;  %v1793_v9 = vmul.f32 1.442695, %v1695_v48  ;;  %v4366_v46 = vsub.f32 %v3807_v34, %v3861_v32 }
 0x4aa   : > { %v2739_v38 = vpop.eup %2738  ;;  %2758 = vpow2.f32 %v1749_v33  ;;  %2399 = vmatprep.subr.bf16.mxu0 %v1862_v62  ;;  %v1863_v3 = vpack.c.bf16 %v2737_v41, %v2735_v37  ;;  %v1700_v33 = vsub.f32 %v4360_v63, %v3861_v32  ;;  %v4361_v62 = vld [vmem:[#allocation25_spill] sm:$0xff]  ;;  %v4370_v63 = vsub.f32 %v3823_v0, %v3861_v32 }
 0x4ab   : > { %v2741_v47 = vpop.eup %2740  ;;  %2760 = vpow2.f32 %v1751_v53  ;;  %v1707_v41 = vsub.f32 %v4361_v62, %v3861_v32  ;;  %v1801_v50 = vmul.f32 1.442695, %v1699_v52  ;;  %v1823_v52 = vmul.f32 1.442695, %v4366_v46 }
 0x4ac   : > { %v2743_v39 = vpop.eup %2742  ;;  %2762 = vpow2.f32 %v1753_v12  ;;  %v1864_v30 = vpack.c.bf16 %v2741_v47, %v2739_v38  ;;  %v1799_v12 = vmul.f32 1.442695, %v1698_v57  ;;  %v1803_v38 = vmul.f32 1.442695, %v1700_v33 }
 0x4ad   : > { %v2745_v10 = vpop.eup %2744  ;;  %2764 = vpow2.f32 %v1755_v23  ;;  %2400 = vmatpush3.bf16.msra.mxu0 %v1854_v28  ;;  %v1813_v28 = vmul.f32 1.442695, %v4362_v20  ;;  %v1817_v49 = vmul.f32 1.442695, %v1707_v41  ;;  %v1858_v33 = vpack.c.bf16 %v4032_v24, %v4025_v25 }
 0x4ae   : > { %v2747_v37 = vpop.eup %2746  ;;  %2766 = vpow2.f32 %v1789_v27  ;;  %2401 = vmatprep.subr.bf16.mxu0 %v1863_v3  ;;  %v1865_v53 = vpack.c.bf16 %v2745_v10, %v2743_v39  ;;  %v4363_v27 = vsub.f32 %v3782_v35, %v3861_v32  ;;  %v4365_v35 = vsub.f32 %v3798_v7, %v3861_v32 }
 0x4af   : > { %v2749_v16 = vpop.eup %2748  ;;  %2768 = vpow2.f32 %v1791_v45  ;;  %v4368_v7 = vsub.f32 %v3802_v31, %v3861_v32  ;;  %v1831_v31 = vmul.f32 1.442695, %v4370_v63  ;;  %v4373_v25 = vsub.f32 %v3831_v15, %v3861_v32  ;;  %v4376_v15 = vld [vmem:[#allocation20_spill] sm:$0xff] }
 0x4b0   : > { %v2751_v48 = vpop.eup %2750  ;;  %2770 = vpow2.f32 %v1793_v9  ;;  %v1866_v23 = vpack.c.bf16 %v2749_v16, %v2747_v37  ;;  %v1815_v3 = vmul.f32 1.442695, %v4363_v27  ;;  %v1821_v45 = vmul.f32 1.442695, %v4365_v35 }
 0x4b1   : > { %v2753_v19 = vpop.eup %2752  ;;  %2772 = vpow2.f32 %v1795_v22  ;;  %2402 = vmatpush3.bf16.msra.mxu0 %v1855_v6  ;;  %v4364_v6 = vsub.f32 %v3775_v43, %v3861_v32  ;;  %v1827_v9 = vmul.f32 1.442695, %v4368_v7  ;;  %v4372_v22 = vsub.f32 %v3819_v18, %v3861_v32 }
 0x4b2   : > { %v4073_v21 = vpop.eup %2754  ;;  %2774 = vpow2.f32 %v1797_v11  ;;  %2403 = vmatprep.subr.bf16.mxu0 %v1864_v30  ;;  %v1867_v26 = vpack.c.bf16 %v2753_v19, %v2751_v48  ;;  %v4369_v30 = vsub.f32 %v3815_v56, %v3861_v32  ;;  %v1837_v24 = vmul.f32 1.442695, %v4373_v25  ;;  %v4378_v19 = vld [vmem:[#allocation23_spill] sm:$0xff] }
 0x4b3   : > { %v2757_v55 = vpop.eup %2756  ;;  %2776 = vpow2.f32 %v1799_v12  ;;  %v1819_v14 = vmul.f32 1.442695, %v4364_v6  ;;  %v1835_v37 = vmul.f32 1.442695, %v4372_v22  ;;  %v4375_v18 = vsub.f32 %v3829_v61, %v3861_v32  ;;  %v2659_v6 = vld [vmem:[%s4282_s6 + $0x24] ss:$16 sps:$4 sm:$0xff]  }
 0x4b4   : > { %v2759_v47 = vpop.eup %2758  ;;  %2778 = vpow2.f32 %v1801_v50  ;;  %v1868_v2 = vpack.c.bf16 %v2757_v55, %v4073_v21  ;;  %v1829_v10 = vmul.f32 1.442695, %v4369_v30  ;;  %v1701_v41 = vsub.f32 %v4376_v15, %v3861_v32 }
 0x4b5   : > { %v2761_v58 = vpop.eup %2760  ;;  %2780 = vpow2.f32 %v1803_v38  ;;  %2404 = vmatpush3.bf16.msra.mxu0 %v1856_v5  ;;  %v1841_v48 = vmul.f32 1.442695, %v4375_v18  ;;  %v4377_v50 = vsub.f32 %v3835_v29, %v3861_v32  ;;  %v1702_v38 = vsub.f32 %v4378_v19, %v3861_v32 }
 0x4b6   : > { %v4088_v57 = vpop.eup %2762  ;;  %2782 = vpow2.f32 %v1813_v28  ;;  %2405 = vmatprep.subr.bf16.mxu0 %v1865_v53  ;;  %v1839_v53 = vmul.f32 1.442695, %v4374_v40  ;;  %v1859_v16 = vpack.c.bf16 %v2761_v58, %v2759_v47  ;;  %v4379_v61 = vsub.f32 %v3847_v13, %v3861_v32 }
 0x4b7   : > { %v2765_v39 = vpop.eup %2764  ;;  %2784 = vpow2.f32 %v1815_v3  ;;  %v4380_v29 = vsub.f32 %v3845_v59, %v3861_v32  ;;  %v1851_v13 = vmul.f32 1.442695, %v1724_v60  ;;  %v2656_v3 = vld [vmem:[%s4282_s6] ss:$16 sps:$4 sm:$0xff]   ;;  %v1805_v58 = vmul.f32 1.442695, %v1701_v41 }
 0x4b8   : > { %v4096_v43 = vpop.eup %2766  ;;  %2786 = vpow2.f32 %v1817_v49  ;;  %v1845_v21 = vmul.f32 1.442695, %v4379_v61  ;;  %v1860_v55 = vpack.c.bf16 %v2765_v39, %v4088_v57  ;;  %v4382_v60 = vld [vmem:[#allocation21_spill] sm:$0xff]  ;;  %v1807_v57 = vmul.f32 1.442695, %v1702_v38 }
 0x4b9   : > { %v4101_v5 = vpop.eup %2768  ;;  %2788 = vpow2.f32 %v1819_v14  ;;  %2406 = vmatpush3.bf16.msra.mxu0 %v1857_v4  ;;  %v1833_v4 = vmul.f32 1.442695, %v4371_v8  ;;  %v1704_v14 = vsub.f32 %v4382_v60, %v3861_v32  ;;  %v2672_v38 = vld [vmem:[%s4282_s6 + $0xc] ss:$16 sps:$4 sm:$0xff]   ;;  %v2670_v61 = vld [vmem:[%s4282_s6 + $0x8] ss:$16 sps:$4 sm:$0xff]  }
 0x4ba   : > { %v4109_v34 = vpop.eup %2770  ;;  %2790 = vpow2.f32 %v1821_v45  ;;  %2407 = vmatprep.subr.bf16.mxu0 %v1866_v23  ;;  %v1843_v23 = vmul.f32 1.442695, %v4377_v50  ;;  %v1869_v39 = vpack.c.bf16 %v4101_v5, %v4096_v43  ;;  %v2661_v5 = vld [vmem:[%s4282_s6 + $0x20] ss:$16 sps:$4 sm:$0xff]  }
 0x4bb   : > { %v4114_v42 = vpop.eup %2772  ;;  %2792 = vpow2.f32 %v1823_v52  ;;  %v2667_v50 = vld [vmem:[%s4282_s6 + $0x60] ss:$16 sps:$4 sm:$0xff]  }
 0x4bc   : > { %v4121_v1 = vpop.eup %2774  ;;  %2794 = vpow2.f32 %v1825_v44 }
 0x4bd   : > { %v4126_v56 = vpop.eup %2776  ;;  %2796 = vpow2.f32 %v1827_v9  ;;  %2408 = vmatpush3.bf16.msra.mxu0 %v1858_v33  ;;  %v2662_v33 = vld [vmem:[%s4282_s6 + $0x44] ss:$16 sps:$4 sm:$0xff]  }
 0x4be   : > { %v4131_v0 = vpop.eup %2778  ;;  %2798 = vpow2.f32 %v1829_v10  ;;  %2409 = vmatprep.subr.bf16.mxu0 %v1867_v26  ;;  %v1849_v26 = vmul.f32 1.442695, %v4380_v29  ;;  %v1870_v10 = vpack.c.bf16 %v4114_v42, %v4109_v34  ;;  %v1871_v34 = vpack.c.bf16 %v4126_v56, %v4121_v1  ;;  %v2664_v1 = vld [vmem:[%s4282_s6 + $0x40] ss:$16 sps:$4 sm:$0xff]   ;;  %v2665_v56 = vld [vmem:[%s4282_s6 + $0x64] ss:$16 sps:$4 sm:$0xff]  }
 0x4bf   : > { %v4136_v11 = vpop.eup %2780  ;;  %2800 = vpow2.f32 %v1831_v31  ;;  %v2681_v29 = vld [vmem:[%s4282_s6 + $0x68] ss:$16 sps:$4 sm:$0xff]  }
 0x4c0   : > { %v4141_v12 = vpop.eup %2782  ;;  %2802 = vpow2.f32 %v1833_v4 }
 0x4c1   : > { %v4146_v62 = vpop.eup %2784  ;;  %2804 = vpow2.f32 %v1835_v37  ;;  %2410 = vmatpush3.bf16.msra.mxu0 %v1859_v16  ;;  %v1872_v16 = vpack.c.bf16 %v4136_v11, %v4131_v0  ;;  %v1901_v0 = vld [vmem:[%s4282_s6 + $0x80] sm:$0x11] }
 0x4c2   : > { %v4153_v51 = vpop.eup %2786  ;;  %2806 = vpow2.f32 %v1837_v24  ;;  %2411 = vmatprep.subr.bf16.mxu0 %v1868_v2  ;;  %v1875_v20 = vpack.c.bf16 %v4146_v62, %v4141_v12  ;;  %v4381_v2 = vld [vmem:[#allocation24_spill] sm:$0xff]  ;;  %v2341_v19 = vcombine.low %v1901_v0, %v1901_v0 }
 0x4c3   : > { %v4162_v28 = vpop.eup %2788  ;;  %2808 = vpow2.f32 %v1839_v53  ;;  %v1703_v59 = vsub.f32 %v4381_v2, %v3861_v32  ;;  %v1811_v32 = vmul.f32 1.442695, %v1704_v14  ;;  %v2673_v12 = vld [vmem:[%s4282_s6 + $0x2c] ss:$16 sps:$4 sm:$0xff]   ;;  %v2675_v62 = vld [vmem:[%s4282_s6 + $0x28] ss:$16 sps:$4 sm:$0xff]  }
 0x4c4   : > { %v2791_v27 = vpop.eup %2790  ;;  %2810 = vpow2.f32 %v1841_v48  ;;  %v1876_v47 = vpack.c.bf16 %v4162_v28, %v4153_v51  ;;  %v2676_v51 = vld [vmem:[%s4282_s6 + $0x4c] ss:$16 sps:$4 sm:$0xff]  }
 0x4c5   : > { %v2793_v49 = vpop.eup %2792  ;;  %2812 = vpow2.f32 %v1843_v23  ;;  %2412 = vmatpush3.bf16.msra.mxu0 %v1860_v55  ;;  %v1809_v44 = vmul.f32 1.442695, %v1703_v59  ;;  %v2342_v23 = vcombine.high %v1901_v0, %v1901_v0  ;;  %v1902_v28 = vld [vmem:[%s4282_s6 + $0x88] sm:$0x11] }
 0x4c6   : > { %v2795_v54 = vpop.eup %2794  ;;  %2814 = vpow2.f32 %v1845_v21  ;;  %v1877_v35 = vpack.c.bf16 %v2793_v49, %v2791_v27  ;;  %v2678_v21 = vld [vmem:[%s4282_s6 + $0x48] ss:$16 sps:$4 sm:$0xff]   ;;  %v2343_v55 = vcombine.low %v1902_v28, %v1902_v28 }
 0x4c7   : > { %v2797_v45 = vpop.eup %2796  ;;  %2816 = vpow2.f32 %v1849_v26  ;;  %v2344_v26 = vcombine.high %v1902_v28, %v1902_v28 }
 0x4c8   : > { %v2799_v46 = vpop.eup %2798  ;;  %2818 = vpow2.f32 %v1851_v13  ;;  %2443 = vmatprep.subr.bf16.mxu0 %v1877_v35  ;;  %2030 = vmatmul.mubr.bf16.vlgmr.msra.gmra.mrb[8].mxu0 %v2656_v3  ;;  %v1878_v52 = vpack.c.bf16 %v2797_v45, %v2795_v54 }
 0x4c9   : > { %v2801_v36 = vpop.eup %2800  ;;  %2820 = vpow2.f32 %v1805_v58  ;;  %2444 = vmatpush3.bf16.msra.mxu0 %v1869_v39  ;;  %2037 = vmatprep.mubr.bf16.mxu0 %v2659_v6 }
 0x4ca   : > { %v2803_v7 = vpop.eup %2802  ;;  %2822 = vpow2.f32 %v1807_v57  ;;  %2445 = vmatprep.subr.bf16.mxu0 %v1878_v52  ;;  %v1879_v9 = vpack.c.bf16 %v2801_v36, %v2799_v46 }
 0x4cb   : > { %v2805_v30 = vpop.eup %2804  ;;  %2824 = vpow2.f32 %v1809_v44 }
 0x4cc   : > { %v2807_v43 = vpop.eup %2806  ;;  %v1880_v63 = vpack.c.bf16 %v2805_v30, %v2803_v7  ;;  %2826 = vpow2.f32 %v1811_v32 }
 0x4cd   : > { %v2809_v31 = vpop.eup %2808  ;;  %2446 = vmatpush3.bf16.msra.mxu0 %v1870_v10 }
 0x4ce   : > { %v2811_v8 = vpop.eup %2810  ;;  %2447 = vmatprep.subr.bf16.mxu0 %v1879_v9  ;;  %v1881_v4 = vpack.c.bf16 %v2809_v31, %v2807_v43 }
 0x4cf   : > { %v2813_v22 = vpop.eup %2812 }
 0x4d0   : > { %v2815_v42 = vpop.eup %2814  ;;  %2038 = vmatmul.mubr.bf16.gmra.mrb[12].mxu0 %v2661_v5  ;;  %v1882_v37 = vpack.c.bf16 %v2813_v22, %v2811_v8 }
 0x4d1   : > { %v2817_v25 = vpop.eup %2816  ;;  %2448 = vmatpush3.bf16.msra.mxu0 %v1871_v34  ;;  %2045 = vmatprep.mubr.bf16.mxu0 %v2662_v33  ;;  %v1883_v24 = vpack.c.bf16 %v4020_v17, %v2815_v42 }
 0x4d2   : > { %v2819_v40 = vpop.eup %2818  ;;  %2449 = vmatprep.subr.bf16.mxu0 %v1880_v63 }
 0x4d3   : > { %v2821_v53 = vpop.eup %2820  ;;  %v1884_v18 = vpack.c.bf16 %v2819_v40, %v2817_v25 }
 0x4d4   : > { %v2823_v48 = vpop.eup %2822 }
 0x4d5   : > { %2450 = vmatpush3.bf16.msra.mxu0 %v1872_v16  ;;  %v2825_v15 = vpop.eup %2824  ;;  %v1873_v17 = vpack.c.bf16 %v2823_v48, %v2821_v53 }
 0x4d6   : > { %2451 = vmatprep.subr.bf16.mxu0 %v1881_v4  ;;  %v2827_v41 = vpop.eup %2826 }
 0x4d7   : > { %v1874_v11 = vpack.c.bf16 %v2827_v41, %v2825_v15 }
 0x4d8   : > { %2046 = vmatmul.mubr.bf16.gmra.mrb[16].mxu0 %v2664_v1 }
 0x4d9   : > { %2452 = vmatpush3.bf16.msra.mxu0 %v1873_v17  ;;  %2053 = vmatprep.mubr.bf16.mxu0 %v2665_v56 }
 0x4da   : > { %2453 = vmatprep.subr.bf16.mxu0 %v1882_v37 }
 0x4dd   : > { %2454 = vmatpush3.bf16.msra.mxu0 %v1874_v11 }
 0x4de   : > { %2455 = vmatprep.subr.bf16.mxu0 %v1883_v24 }
 0x4e0   : > { %2054 = vmatmul.mubr.bf16.gmra.mrb[20].mxu0 %v2667_v50 }
 0x4e1   : > { %2456 = vmatpush3.bf16.msra.mxu0 %v1875_v20  ;;  %2061 = vmatprep.mubr.bf16.mxu0 %v2342_v23  ;;  %v2679_v20 = vld [vmem:[%s4282_s6 + $0x6c] ss:$16 sps:$4 sm:$0xff]  }
 0x4e2   : > { %2457 = vmatprep.subr.bf16.mxu0 %v1884_v18 }
 0x4e5   : > { %2458 = vmatpush3.bf16.msra.mxu0 %v1876_v47 }
 0x4e8   : > { %2062 = vmatmul.mubr.bf16.gmra.mrb[24].mxu0 %v2341_v19 }
 0x4e9   : > { %2101 = vmatprep.mubr.bf16.mxu0 %v2672_v38 }
 0x4f0   : > { %2102 = vmatmul.mubr.bf16.vlgmr.msra.gmra.mrb[28].mxu0 %v2670_v61 }
 0x4f1   : > { %2109 = vmatprep.mubr.bf16.mxu0 %v2673_v12 }
 0x4f8   : > { %2110 = vmatmul.mubr.bf16.gmra.mrb[32].mxu0 %v2675_v62 }
 0x4f9   : > { %2117 = vmatprep.mubr.bf16.mxu0 %v2676_v51 }
 0x500   : > { %2118 = vmatmul.mubr.bf16.gmra.mrb[36].mxu0 %v2678_v21 }
 0x501   : > { %2125 = vmatprep.mubr.bf16.mxu0 %v2679_v20 }
 0x508   : > { %2126 = vmatmul.mubr.bf16.gmra.mrb[40].mxu0 %v2681_v29 }
 0x509   : > { %2133 = vmatprep.mubr.bf16.mxu0 %v2344_v26 }
 0x510   : > { %2134 = vmatmul.mubr.bf16.gmra.mrb[44].mxu0 %v2343_v55  ;;  %v2170_v55 = vpop.permute.xlu1 %2169 }
 0x59b   : > { %v2413_v27 = vpop.f32.mrb[8].mxu0 }
 0x59c   : > { %v2414_v13 = vpop.f32.mrb[9].mxu0 }
 0x59d   : > { %v2415_v3 = vadd.f32 %v2414_v13, %v2413_v27  ;;  %v2416_v47 = vpop.f32.mrb[10].mxu0 }
 0x59e   : > { %v2417_v49 = vpop.f32.mrb[11].mxu0 }
 0x59f   : > { %v2418_v2 = vadd.f32 %v2417_v49, %v2416_v47 }
 0x5a3   : > { %v2419_v59 = vpop.f32.mrb[12].mxu0 }
 0x5a4   : > { %v2420_v58 = vpop.f32.mrb[13].mxu0 }
 0x5a5   : > { %v2421_v6 = vadd.f32 %v2420_v58, %v2419_v59  ;;  %v2422_v54 = vpop.f32.mrb[14].mxu0  ;;  %v2180_v59 = vpop.permute.xlu1 %2179 }
 0x5a6   : > { %v2423_v60 = vpop.f32.mrb[15].mxu0 }
 0x5a7   : > { %v2424_v14 = vadd.f32 %v2423_v60, %v2422_v54 }
 0x5a9   : > { %v2190_v60 = vpop.permute.xlu1 %2189 }
 0x5ab   : > { %v2425_v57 = vpop.f32.mrb[16].mxu0 }
 0x5ac   : > { %v2426_v35 = vpop.f32.mrb[17].mxu0 }
 0x5ad   : > { %v2427_v45 = vadd.f32 %v2426_v35, %v2425_v57  ;;  %v2428_v39 = vpop.f32.mrb[18].mxu0 }
 0x5ae   : > { %v2429_v46 = vpop.f32.mrb[19].mxu0 }
 0x5af   : > { %v2430_v52 = vadd.f32 %v2429_v46, %v2428_v39 }
 0x5b3   : > { %v2431_v36 = vpop.f32.mrb[20].mxu0 }
 0x5b4   : > { %v2432_v44 = vpop.f32.mrb[21].mxu0 }
 0x5b5   : > { %v2433_v7 = vadd.f32 %v2432_v44, %v2431_v36  ;;  %v2434_v32 = vpop.f32.mrb[22].mxu0 }
 0x5b6   : > { %v2435_v9 = vpop.f32.mrb[23].mxu0 }
 0x5b7   : > { %v2436_v30 = vadd.f32 %v2435_v9, %v2434_v32  ;;  %v2200_v9 = vpop.permute.xlu1 %2199 }
 0x5bb   : > { %v2437_v10 = vpop.f32.mrb[24].mxu0 }
 0x5bc   : > { %v2438_v43 = vpop.f32.mrb[25].mxu0 }
 0x5bd   : > { %v2439_v5 = vadd.f32 %v2438_v43, %v2437_v10  ;;  %v2440_v63 = vpop.f32.mrb[26].mxu0 }
 0x5be   : > { %v2441_v31 = vpop.f32.mrb[27].mxu0 }
 0x5c3   : > { %v2459_v33 = vpop.f32.mrb[28].mxu0 }
 0x5c4   : > { %v2460_v8 = vpop.f32.mrb[29].mxu0 }
 0x5c5   : > { %v2461_v4 = vadd.f32 %v2460_v8, %v2459_v33  ;;  %v2462_v22 = vpop.f32.mrb[30].mxu0 }
 0x5c6   : > { %v2463_v34 = vpop.f32.mrb[31].mxu0 }
 0x5c7   : > { %v2104_v42 = vadd.f32 %v2461_v4, %v2415_v3  ;;  %v2464_v37 = vadd.f32 %v2463_v34, %v2462_v22  ;;  %v2165_v3 = vpop.permute.xlu0 %2164  ;;  %v2830_v22 = vld [vmem:[%s2933_s9] sm:$0xff] }
 0x5c9   : > { %v2107_v25 = vadd.f32 %v2464_v37, %v2418_v2  ;;  %v2142_v2 = vlaneseq }
 0x5cb   : > { %v2465_v24 = vpop.f32.mrb[32].mxu0  ;;  %v2175_v58 = vpop.permute.xlu0 %2174 }
 0x5cc   : > { %v2466_v40 = vpop.f32.mrb[33].mxu0 }
 0x5cd   : > { %v2467_v53 = vadd.f32 %v2466_v40, %v2465_v24  ;;  %v2468_v16 = vpop.f32.mrb[34].mxu0  ;;  %v2833_v40 = vld [vmem:[%s2933_s9 + $0x18] sm:$0xff] }
 0x5ce   : > { %v2469_v18 = vpop.f32.mrb[35].mxu0 }
 0x5cf   : > { %v2112_v48 = vadd.f32 %v2467_v53, %v2421_v6  ;;  %v2470_v1 = vadd.f32 %v2469_v18, %v2468_v16  ;;  %v2143_v6 = vshrl.u32 %v2142_v2, 7  ;;  %v2834_v16 = vld [vmem:[%s2933_s9 + $0x20] sm:$0xff] }
 0x5d1   : > { %v2115_v56 = vadd.f32 %v2470_v1, %v2424_v14  ;;  %v2144_v54 = vsub.s32 0, %v2143_v6  ;;  %v2185_v14 = vpop.permute.xlu0 %2184 }
 0x5d3   : > { %v2471_v15 = vpop.f32.mrb[36].mxu0 }
 0x5d4   : > { %v2472_v17 = vpop.f32.mrb[37].mxu0 }
 0x5d5   : > { %v2473_v41 = vadd.f32 %v2472_v17, %v2471_v15  ;;  %v2474_v0 = vpop.f32.mrb[38].mxu0  ;;  %v2837_v17 = vld [vmem:[%s2933_s9 + $0x38] sm:$0xff] }
 0x5d6   : > { %v2475_v11 = vpop.f32.mrb[39].mxu0 }
 0x5d7   : > { %v2120_v50 = vadd.f32 %v2473_v41, %v2427_v45  ;;  %v2476_v23 = vadd.f32 %v2475_v11, %v2474_v0 }
 0x5d9   : > { %v2123_v19 = vadd.f32 %v2476_v23, %v2430_v52 }
 0x5db   : > { %v2477_v38 = vpop.f32.mrb[40].mxu0 }
 0x5dc   : > { %v2478_v61 = vpop.f32.mrb[41].mxu0 }
 0x5dd   : > { %v2479_v12 = vadd.f32 %v2478_v61, %v2477_v38  ;;  %v2480_v62 = vpop.f32.mrb[42].mxu0 }
 0x5de   : > { %v2481_v51 = vpop.f32.mrb[43].mxu0 }
 0x5df   : > { %v2128_v21 = vadd.f32 %v2479_v12, %v2433_v7  ;;  %v2482_v20 = vadd.f32 %v2481_v51, %v2480_v62 }
 0x5e1   : > { %v2131_v28 = vadd.f32 %v2482_v20, %v2436_v30  ;;  %v2195_v30 = vpop.permute.xlu0 %2194 }
 0x5e3   : > { %v2483_v29 = vpop.f32.mrb[44].mxu0 }
 0x5e4   : > { %v2484_v26 = vpop.f32.mrb[45].mxu0 }
 0x5e5   : > { %v2485_v27 = vadd.f32 %v2484_v26, %v2483_v29  ;;  %v2486_v13 = vpop.f32.mrb[46].mxu0 }
 0x5e6   : > { %v2487_v47 = vpop.f32.mrb[47].mxu0 }
 0x5e7   : > { %v2136_v49 = vadd.f32 %v2485_v27, %v2439_v5 }
 0x5e9   : > { %2828 = vrcp.f32 %v2136_v49 }
 0x5f3   : > { %v2829_v57 = vpop.eup %2828 }
 0x5f4   : > { %v2145_v35 = vrot.slane %v2829_v57, %v2144_v54 }
 0x5f6   : > { %v2146_v45 = vmul.f32 %v2145_v35, %v2104_v42  ;;  %v2147_v39 = vmul.f32 %v2145_v35, %v2107_v25  ;;  %v2148_v46 = vmul.f32 %v2145_v35, %v2112_v48  ;;  %v2149_v52 = vmul.f32 %v2145_v35, %v2115_v56  ;;  %v2831_v42 = vld [vmem:[%s2933_s9 + $0x8] sm:$0xff]  ;;  %v2832_v25 = vld [vmem:[%s2933_s9 + $0x10] sm:$0xff] }
 0x5f7   : > { %v2150_v36 = vmul.f32 %v2145_v35, %v2120_v50  ;;  %v2151_v44 = vmul.f32 %v2145_v35, %v2123_v19  ;;  %v2152_v7 = vmul.f32 %v2145_v35, %v2128_v21  ;;  %v2153_v32 = vmul.f32 %v2145_v35, %v2131_v28  ;;  %v2835_v48 = vld [vmem:[%s2933_s9 + $0x28] sm:$0xff]  ;;  %v2836_v56 = vld [vmem:[%s2933_s9 + $0x30] sm:$0xff]  ;;  %s2232_s9 = sshll.u32 (%p33_p0), %s2874_s28, 4  ;;  %s2233_s9 = int_to_ptr.vmem [resolvable:$true] %s2232_s9 }
 0x5f8   : > { %v2202_v10 = vadd.f32 %v2165_v3, %v2146_v45  ;;  %v2203_v43 = vadd.f32 %v2170_v55, %v2147_v39  ;;  %v2204_v5 = vadd.f32 %v2175_v58, %v2148_v46  ;;  %v2205_v63 = vadd.f32 %v2180_v59, %v2149_v52  ;;  %s2838_s20 = scalar_lea.vmem (%p33_p0), %s2233_s9, 4096  ;;  %p2843_p2 = scmp.lt.s32.totalorder (%p33_p0), %s2233_s9, %s2233_s9 }
 0x5f9   : > { %v2206_v31 = vadd.f32 %v2185_v14, %v2150_v36  ;;  %v2207_v33 = vadd.f32 %v2190_v60, %v2151_v44  ;;  %v2208_v8 = vadd.f32 %v2195_v30, %v2152_v7  ;;  %v2209_v4 = vadd.f32 %v2200_v9, %v2153_v32  ;;  %35 = sbr.rel (!%p33_p0) target bundleno = 1 (0x1), region = 61  ;;  %p2839_p1 = scmp.ne.s32.totalorder (%p33_p0), %s2233_s9, %s2838_s20 }
 0x5fa   : > { %v2210_v34 = vadd.f32 %v2830_v22, %v2202_v10  ;;  %v2211_v37 = vadd.f32 %v2831_v42, %v2203_v43  ;;  %v2212_v24 = vadd.f32 %v2832_v25, %v2204_v5  ;;  %v2213_v53 = vadd.f32 %v2833_v40, %v2205_v63  ;;  %p2844_p3 = scmp.lt.s32.totalorder (%p33_p0), %s2838_s20, %s2838_s20 }
 0x5fb   : > { %v2214_v18 = vadd.f32 %v2834_v16, %v2206_v31  ;;  %v2215_v1 = vadd.f32 %v2835_v48, %v2207_v33  ;;  %v2216_v15 = vadd.f32 %v2836_v56, %v2208_v8  ;;  %v2217_v41 = vadd.f32 %v2837_v17, %v2209_v4 }
 0x5fc   : > { %2219 = vst.msk [vmem:[%s2218_s19] sm:$0xff] %vm47_vm0, %v2210_v34  ;;  %2220 = vst.msk [vmem:[%s2218_s19 + $0x8] sm:$0xff] %vm47_vm0, %v2211_v37  ;;  %p2845_p4 = por (%p33_p0), %p2844_p3, %p2843_p2 }
 0x5fd   : > { %2221 = vst.msk [vmem:[%s2218_s19 + $0x10] sm:$0xff] %vm47_vm0, %v2212_v24  ;;  %2222 = vst.msk [vmem:[%s2218_s19 + $0x18] sm:$0xff] %vm47_vm0, %v2213_v53 }
 0x5fe   : > { %2223 = vst.msk [vmem:[%s2218_s19 + $0x20] sm:$0xff] %vm47_vm0, %v2214_v18  ;;  %2224 = vst.msk [vmem:[%s2218_s19 + $0x28] sm:$0xff] %vm47_vm0, %v2215_v1  ;;  %p2846_p5 = pnand (%p33_p0), %p2845_p4, %p2839_p1 }
 0x5ff   : > { %2225 = vst.msk [vmem:[%s2218_s19 + $0x30] sm:$0xff] %vm47_vm0, %v2216_v15  ;;  %2226 = vst.msk [vmem:[%s2218_s19 + $0x38] sm:$0xff] %vm47_vm0, %v2217_v41 }
 0x600   :  { %2849 = shalt.err (!%p2846_p5)
}
 0x601   :  { %s2850_s23 = scalar_lea.hbm %s4284_s8, 4096 }
 0x602   :  { %p2851_p6 = scmp.ne.s32.totalorder %s4284_s8, %s2850_s23  ;;  %p2854_p7 = scmp.lt.u32.totalorder %s2850_s23, %s4284_s8 }
 0x604   :  { %p2856_p8 = pnand %p2854_p7, %p2851_p6 }
 0x606   :  { %2859 = shalt.err (!%p2856_p8)
}
 0x607   :  { %s2875_s0 = smov 128   ;;  %s2876_s1 = smov 8  }
 0x608   :  { %2238 = dma.vmem_to_hbm [thread:$0]  %s2233_s9, 4096, %s4284_s8, [#allocation3], %s2875_s0, %s2875_s0, %s2876_s1  }
 0x609   :  { %2864 = dma.done.wait [#allocation3], 4096  }
 0x60a   :  { %2865 = vsyncadd [#allocation3], 4294963200 }
 0x60b   :  { %2242 = vsyncpa [#allocation3], 1 }

</bundles_post_ra>
